<compile_context>
chip_gen: v7x
topology: tpu7x:2x2x1
jax: 0.10.0
libtpu: 0.0.40
codegen_flags: <defaults>
</compile_context>

<pallas_src>
import math

import jax
import jax.numpy as jnp
from jax.experimental import pallas as pl
from jax.experimental.pallas import tpu as pltpu

# ----------------------- small, module-consistent sizes ---------------------
BATCH = 2           # batch
NUM_TILES = 16      # N tiles per example (num_tiles in the reference file)
IN_CH = 3           # RGB
H = W = 8           # tile spatial size
NC = 32             # self.nc (backbone feature channels; 1280 for real b0)
NUM_CLUSTERS = 8    # NetVLAD cluster_size
NUM_CLASSES = 1     # fc output
BN_EPS = 1e-3       # matches nn.BatchNorm2d(eps=0.001)

_HI = jax.lax.Precision.HIGHEST


# ------------------------------ fused kernel --------------------------------
def _make_fused_kernel(B, N, HW, Cin, F, K, C):
    BN = B * N

    def kernel(x_ref, pf_ref, pw_ref, o_ref):
        """Whole forward in one VMEM-resident block.

        x_ref  : (Cin, HW*BN)  lane-dense pixels, p = hw*BN + bn
        pf_ref : (F, 8)        packed per-channel slab, columns:
                               0 stem bias | 1 BN scale | 2 BN shift |
                               3 linear bias (rows 0:K) | 4 fc bias (rows 0:C) |
                               5..5+Cin stem weight^T
        pw_ref : (2+C, K, F)   [0] = w_lin^T, [1] = cluster_weights2^T,
                               [2+c] = fc weight for class c as [k, f]
        o_ref  : (B, C)
        """
        pf = pf_ref[...]
        x = x_ref[...]                                   # (Cin, P)

        # ---- backbone stand-in: 1x1 conv + ReLU as Cin lane-dense FMAs ----
        acc = pf[:, 5:6] * x[0:1, :]                     # (F,1)*(1,P) -> (F,P)
        for c in range(1, Cin):
            acc = acc + pf[:, 5 + c:6 + c] * x[c:c + 1, :]
        feats = jnp.maximum(acc + pf[:, 0:1], 0.0)       # (F, P), P = HW*BN

        # ---- AdaptiveAvgPool2d(1): tree-fold the hw-major lane axis to BN ----
        s = feats
        while s.shape[1] > BN:                           # log2(HW) static folds
            half = s.shape[1] // 2
            s = s[:, :half] + s[:, half:]
        tiles_t = s * (1.0 / HW)                         # (F, BN)

        # ---- BatchNorm2d (eval) hoisted below the pool (exact commute) ----
        tiles_t = tiles_t * pf[:, 1:2] + pf[:, 2:3]
        # Dropout(p=0.2): identity in eval mode.

        # ---- NetVLAD: one-shot assignment matmul for all B*N tiles ----
        logits_t = jnp.dot(pw_ref[0], tiles_t,
                           preferred_element_type=jnp.float32,
                           precision=_HI) + pf[0:K, 3:4]          # (K, BN)
        cw_t = pw_ref[1]                                          # (K, F)

        rows = []
        for b in range(B):                               # B=2, unrolled
            lo = logits_t[:, b * N:(b + 1) * N]          # (K, N)
            xbT = tiles_t[:, b * N:(b + 1) * N]          # (F, N)
            # nn.Softmax(dim=1) on the (B, N, K) activation == softmax over N.
            lo = lo - jnp.max(lo, axis=1, keepdims=True)
            e = jnp.exp(lo)
            den = jnp.sum(e, axis=1, keepdims=True)      # (K, 1)
            r = pl.reciprocal(den, approx=True)          # EUP slot
            r = r * (2.0 - den * r)                      # 2 Newton steps ->
            r = r * (2.0 - den * r)                      # f32-accurate softmax
            act_t = e * r                                # (K, N)
            a_sum = jnp.sum(act_t, axis=1, keepdims=True)  # (K,1) (== 1 analytically)
            # vlad^T[k, f] = sum_n act[n, k] * tiles[n, f]
            vlad_t = jax.lax.dot_general(
                act_t, xbT, (((1,), (1,)), ((), ())),
                preferred_element_type=jnp.float32, precision=_HI)  # (K, F)
            vlad_t = vlad_t - a_sum * cw_t
            # fc folded in; flatten order f*K+k matches torch's (B,F,K) view.
            vals = [jnp.sum(vlad_t * pw_ref[2 + c], axis=(0, 1), keepdims=True)
                    for c in range(C)]                   # each (1, 1)
            rows.append(vals[0] if C == 1 else jnp.concatenate(vals, axis=1))

        out = rows[0] if B == 1 else jnp.concatenate(rows, axis=0)  # (B, C)
        o_ref[...] = out + pf[0:C, 4:5].reshape(1, C)    # single store

    return kernel


# ------------------------------- model wrapper -------------------------------
def model_forward(x, params):
    """x: (B, N, 3, H, W) float32 -> (B, NUM_CLASSES) float32."""
    B, N, Cin, h, w = x.shape
    BN = B * N
    HW = h * w
    F = params["w_stem"].shape[1]
    K = params["w_lin"].shape[1]
    C = params["w_fc"].shape[1]
    assert HW & (HW - 1) == 0, "tree-fold pool assumes power-of-two H*W"
    assert K <= F and C <= F and 5 + Cin <= 8

    # Layout plumbing: (B,N,Cin,H,W) -> (Cin, HW*BN) with p = hw*BN + bn so the
    # 2048-wide pixel axis is the lane axis (no lane padding in the kernel).
    x_cp = jnp.transpose(x.reshape(BN, Cin, HW), (1, 2, 0)).reshape(Cin, HW * BN)

    # Fold eval-mode BatchNorm2d into per-channel scale/shift.
    scale = params["bn_gamma"] / jnp.sqrt(params["bn_var"] + BN_EPS)
    shift = params["bn_beta"] - params["bn_mean"] * scale

    # One packed per-channel slab (single tiny DMA instead of five).
    pf = jnp.zeros((F, 8), jnp.float32)
    pf = pf.at[:, 0].set(params["b_stem"].reshape(F))
    pf = pf.at[:, 1].set(scale)
    pf = pf.at[:, 2].set(shift)
    pf = pf.at[:K, 3].set(params["b_lin"].reshape(K))
    pf = pf.at[:C, 4].set(params["b_fc"].reshape(C))
    pf = pf.at[:, 5:5 + Cin].set(params["w_stem"].T)

    # One packed weight stack: w_lin^T, cw2^T, fc weight per class as (K, F)
    # with wfc_kf[c, k, f] == W_fc[f*K + k, c]  (torch flatten order).
    wfc_kf = jnp.transpose(params["w_fc"].reshape(F, K, C), (2, 1, 0))
    pw = jnp.concatenate(
        [params["w_lin"].T[None], params["cw2"].T[None], wfc_kf], axis=0)

    kernel = _make_fused_kernel(B, N, HW, Cin, F, K, C)
    return pl.pallas_call(
        kernel,
        out_shape=jax.ShapeDtypeStruct((B, C), jnp.float32),
        grid=(1,),
        in_specs=[
            pl.BlockSpec((Cin, HW * BN), lambda i: (0, 0)),
            pl.BlockSpec((F, 8), lambda i: (0, 0)),
            pl.BlockSpec((2 + C, K, F), lambda i: (0, 0, 0)),
        ],
        out_specs=pl.BlockSpec((B, C), lambda i: (0, 0)),
        compiler_params=pltpu.CompilerParams(
            dimension_semantics=("arbitrary",)),
    )(x_cp, pf, pw)


def model_forward_reference(x, params):
    """Plain-JAX reference of the same math (HIGHEST-precision matmuls)."""
    B, N, Cin, h, w = x.shape
    F = params["w_stem"].shape[1]
    K = params["w_lin"].shape[1]
    xi = jnp.transpose(x.reshape(B * N, Cin, h * w), (0, 2, 1))   # (BN, HW, Cin)
    feats = jnp.maximum(
        jnp.matmul(xi, params["w_stem"], precision=_HI) + params["b_stem"], 0.0)
    scale = params["bn_gamma"] / jnp.sqrt(params["bn_var"] + BN_EPS)
    shift = params["bn_beta"] - params["bn_mean"] * scale
    feats = feats * scale + shift
    tiles = feats.mean(axis=1).reshape(B, N, F)
    logits = jnp.matmul(tiles, params["w_lin"], precision=_HI) + params["b_lin"]
    act = jax.nn.softmax(logits, axis=1)      # nn.Softmax(dim=1) on (B, N, K)
    a = act.sum(axis=1, keepdims=True) * params["cw2"]            # (B, F, K)
    vlad = jnp.einsum("bnf,bnk->bfk", tiles, act, precision=_HI) - a
    return (jnp.matmul(vlad.reshape(B, F * K), params["w_fc"], precision=_HI)
            + params["b_fc"])


def init_params(key):
    ks = jax.random.split(key, 10)
    F, K = NC, NUM_CLUSTERS
    return {
        # stem stand-in (1x1 conv)
        "w_stem": 0.1 * jax.random.normal(ks[0], (IN_CH, NC), jnp.float32),
        "b_stem": 0.01 * jax.random.normal(ks[1], (1, NC), jnp.float32),
        # BatchNorm2d(nc) running stats + affine (eval mode)
        "bn_gamma": jax.random.uniform(ks[2], (NC,), jnp.float32, 0.5, 1.5),
        "bn_beta": 0.1 * jax.random.normal(ks[3], (NC,), jnp.float32),
        "bn_mean": 0.1 * jax.random.normal(ks[4], (NC,), jnp.float32),
        "bn_var": jax.random.uniform(ks[5], (NC,), jnp.float32, 0.5, 1.5),
        # NetVLAD linear(F -> K) stored transposed, bias as (1, K)
        "w_lin": jax.random.normal(ks[6], (F, K), jnp.float32) / math.sqrt(F),
        "b_lin": 0.01 * jax.random.normal(ks[7], (1, K), jnp.float32),
        # cluster_weights2 (1, F, K) with std 1/sqrt(F) -> stored (F, K)
        "cw2": jax.random.normal(ks[8], (F, K), jnp.float32) / math.sqrt(F),
        # fc(K*F -> num_classes) stored transposed, bias (1, num_classes)
        "w_fc": jax.random.normal(ks[9], (F * K, NUM_CLASSES), jnp.float32)
        / math.sqrt(F * K),
        "b_fc": jnp.zeros((1, NUM_CLASSES), jnp.float32),
    }


if __name__ == "__main__":
    key = jax.random.PRNGKey(0)
    k_x, k_p = jax.random.split(key)
    x = jax.random.normal(k_x, (BATCH, NUM_TILES, IN_CH, H, W), jnp.float32)
    params = init_params(k_p)

    fwd = jax.jit(model_forward)
    out = jax.block_until_ready(fwd(x, params))
    assert out.shape == (BATCH, NUM_CLASSES), out.shape
    assert bool(jnp.all(jnp.isfinite(out)))

    ref = jax.block_until_ready(model_forward_reference(x, params))
    assert bool(jnp.allclose(out, ref, rtol=1e-4, atol=1e-5)), (out, ref)
    print("KERNEL_OK")
</pallas_src>

<mosaic_0001>
module attributes {stable_mosaic.version = 11 : i64} {
  func.func @kernel(%arg0: i32, %arg1: memref<3x2048xf32, #tpu.memory_space<vmem>>, %arg2: memref<32x8xf32, #tpu.memory_space<vmem>>, %arg3: memref<3x8x32xf32, #tpu.memory_space<vmem>>, %arg4: memref<2x1xf32, #tpu.memory_space<vmem>>) attributes {dimension_semantics = [#tpu.dimension_semantics<arbitrary>], iteration_bounds = array<i64: 1>, scalar_prefetch = 0 : i64, scratch_operands = 0 : i64, tpu.core_type = #tpu.core_type<tc>, window_params = [{pipeline_mode = #tpu.pipeline_mode<synchronous>, transform_indices = @transform_0, window_bounds = array<i64: 3, 2048>}, {pipeline_mode = #tpu.pipeline_mode<synchronous>, transform_indices = @transform_1, window_bounds = array<i64: 32, 8>}, {pipeline_mode = #tpu.pipeline_mode<synchronous>, transform_indices = @transform_2, window_bounds = array<i64: 3, 8, 32>}, {pipeline_mode = #tpu.pipeline_mode<synchronous>, transform_indices = @transform_3, window_bounds = array<i64: 2, 1>}]} {
    %c0 = arith.constant 0 : index
    %c0_0 = arith.constant 0 : index
    %0 = vector.load %arg2[%c0, %c0_0] : memref<32x8xf32, #tpu.memory_space<vmem>>, vector<32x8xf32>
    %c0_1 = arith.constant 0 : index
    %c0_2 = arith.constant 0 : index
    %1 = vector.load %arg1[%c0_1, %c0_2] : memref<3x2048xf32, #tpu.memory_space<vmem>>, vector<3x2048xf32>
    %2 = vector.extract_strided_slice %0 {offsets = [0, 5], sizes = [32, 1], strides = [1, 1]} : vector<32x8xf32> to vector<32x1xf32>
    %3 = vector.extract_strided_slice %1 {offsets = [0, 0], sizes = [1, 2048], strides = [1, 1]} : vector<3x2048xf32> to vector<1x2048xf32>
    %4 = vector.broadcast %2 : vector<32x1xf32> to vector<32x2048xf32>
    %5 = vector.broadcast %3 : vector<1x2048xf32> to vector<32x2048xf32>
    %6 = arith.mulf %4, %5 : vector<32x2048xf32>
    %7 = vector.extract_strided_slice %0 {offsets = [0, 6], sizes = [32, 1], strides = [1, 1]} : vector<32x8xf32> to vector<32x1xf32>
    %8 = vector.extract_strided_slice %1 {offsets = [1, 0], sizes = [1, 2048], strides = [1, 1]} : vector<3x2048xf32> to vector<1x2048xf32>
    %9 = vector.broadcast %7 : vector<32x1xf32> to vector<32x2048xf32>
    %10 = vector.broadcast %8 : vector<1x2048xf32> to vector<32x2048xf32>
    %11 = arith.mulf %9, %10 : vector<32x2048xf32>
    %12 = arith.addf %6, %11 : vector<32x2048xf32>
    %13 = vector.extract_strided_slice %0 {offsets = [0, 7], sizes = [32, 1], strides = [1, 1]} : vector<32x8xf32> to vector<32x1xf32>
    %14 = vector.extract_strided_slice %1 {offsets = [2, 0], sizes = [1, 2048], strides = [1, 1]} : vector<3x2048xf32> to vector<1x2048xf32>
    %15 = vector.broadcast %13 : vector<32x1xf32> to vector<32x2048xf32>
    %16 = vector.broadcast %14 : vector<1x2048xf32> to vector<32x2048xf32>
    %17 = arith.mulf %15, %16 : vector<32x2048xf32>
    %18 = arith.addf %12, %17 : vector<32x2048xf32>
    %19 = vector.extract_strided_slice %0 {offsets = [0, 0], sizes = [32, 1], strides = [1, 1]} : vector<32x8xf32> to vector<32x1xf32>
    %20 = vector.broadcast %19 : vector<32x1xf32> to vector<32x2048xf32>
    %21 = arith.addf %18, %20 : vector<32x2048xf32>
    %cst = arith.constant 0.000000e+00 : f32
    %22 = vector.broadcast %cst : f32 to vector<32x2048xf32>
    %23 = arith.maximumf %21, %22 : vector<32x2048xf32>
    %24 = vector.extract_strided_slice %23 {offsets = [0, 0], sizes = [32, 1024], strides = [1, 1]} : vector<32x2048xf32> to vector<32x1024xf32>
    %25 = vector.extract_strided_slice %23 {offsets = [0, 1024], sizes = [32, 1024], strides = [1, 1]} : vector<32x2048xf32> to vector<32x1024xf32>
    %26 = arith.addf %24, %25 : vector<32x1024xf32>
    %27 = vector.extract_strided_slice %26 {offsets = [0, 0], sizes = [32, 512], strides = [1, 1]} : vector<32x1024xf32> to vector<32x512xf32>
    %28 = vector.extract_strided_slice %26 {offsets = [0, 512], sizes = [32, 512], strides = [1, 1]} : vector<32x1024xf32> to vector<32x512xf32>
    %29 = arith.addf %27, %28 : vector<32x512xf32>
    %30 = vector.extract_strided_slice %29 {offsets = [0, 0], sizes = [32, 256], strides = [1, 1]} : vector<32x512xf32> to vector<32x256xf32>
    %31 = vector.extract_strided_slice %29 {offsets = [0, 256], sizes = [32, 256], strides = [1, 1]} : vector<32x512xf32> to vector<32x256xf32>
    %32 = arith.addf %30, %31 : vector<32x256xf32>
    %33 = vector.extract_strided_slice %32 {offsets = [0, 0], sizes = [32, 128], strides = [1, 1]} : vector<32x256xf32> to vector<32x128xf32>
    %34 = vector.extract_strided_slice %32 {offsets = [0, 128], sizes = [32, 128], strides = [1, 1]} : vector<32x256xf32> to vector<32x128xf32>
    %35 = arith.addf %33, %34 : vector<32x128xf32>
    %36 = vector.extract_strided_slice %35 {offsets = [0, 0], sizes = [32, 64], strides = [1, 1]} : vector<32x128xf32> to vector<32x64xf32>
    %37 = vector.extract_strided_slice %35 {offsets = [0, 64], sizes = [32, 64], strides = [1, 1]} : vector<32x128xf32> to vector<32x64xf32>
    %38 = arith.addf %36, %37 : vector<32x64xf32>
    %39 = vector.extract_strided_slice %38 {offsets = [0, 0], sizes = [32, 32], strides = [1, 1]} : vector<32x64xf32> to vector<32x32xf32>
    %40 = vector.extract_strided_slice %38 {offsets = [0, 32], sizes = [32, 32], strides = [1, 1]} : vector<32x64xf32> to vector<32x32xf32>
    %41 = arith.addf %39, %40 : vector<32x32xf32>
    %cst_3 = arith.constant 1.562500e-02 : f32
    %42 = vector.broadcast %cst_3 : f32 to vector<32x32xf32>
    %43 = arith.mulf %41, %42 : vector<32x32xf32>
    %44 = vector.extract_strided_slice %0 {offsets = [0, 1], sizes = [32, 1], strides = [1, 1]} : vector<32x8xf32> to vector<32x1xf32>
    %45 = vector.broadcast %44 : vector<32x1xf32> to vector<32x32xf32>
    %46 = arith.mulf %43, %45 : vector<32x32xf32>
    %47 = vector.extract_strided_slice %0 {offsets = [0, 2], sizes = [32, 1], strides = [1, 1]} : vector<32x8xf32> to vector<32x1xf32>
    %48 = vector.broadcast %47 : vector<32x1xf32> to vector<32x32xf32>
    %49 = arith.addf %46, %48 : vector<32x32xf32>
    %c0_4 = arith.constant 0 : index
    %c0_5 = arith.constant 0 : index
    %c0_6 = arith.constant 0 : index
    %50 = vector.load %arg3[%c0_4, %c0_5, %c0_6] : memref<3x8x32xf32, #tpu.memory_space<vmem>>, vector<1x8x32xf32>
    %51 = vector.shape_cast %50 : vector<1x8x32xf32> to vector<8x32xf32>
    %cst_7 = arith.constant dense<0.000000e+00> : vector<8x32xf32>
    %52 = tpu.matmul %51, %49, %cst_7 {dimension_numbers = #tpu.dot_dimension_numbers<[1], [0], [0], [1], [0, 0, 1, 1], [], []>, precision = #tpu.contract_precision<fp32>} : vector<8x32xf32>, vector<32x32xf32>, vector<8x32xf32> -> vector<8x32xf32>
    %53 = vector.extract_strided_slice %0 {offsets = [0, 3], sizes = [8, 1], strides = [1, 1]} : vector<32x8xf32> to vector<8x1xf32>
    %54 = vector.broadcast %53 : vector<8x1xf32> to vector<8x32xf32>
    %55 = arith.addf %52, %54 : vector<8x32xf32>
    %c1 = arith.constant 1 : index
    %c0_8 = arith.constant 0 : index
    %c0_9 = arith.constant 0 : index
    %56 = vector.load %arg3[%c1, %c0_8, %c0_9] : memref<3x8x32xf32, #tpu.memory_space<vmem>>, vector<1x8x32xf32>
    %57 = vector.shape_cast %56 : vector<1x8x32xf32> to vector<8x32xf32>
    %58 = vector.extract_strided_slice %55 {offsets = [0, 0], sizes = [8, 16], strides = [1, 1]} : vector<8x32xf32> to vector<8x16xf32>
    %59 = vector.extract_strided_slice %49 {offsets = [0, 0], sizes = [32, 16], strides = [1, 1]} : vector<32x32xf32> to vector<32x16xf32>
    %cst_10 = arith.constant dense<0xFF800000> : vector<8xf32>
    %60 = vector.multi_reduction <maximumf>, %58, %cst_10 [1] : vector<8x16xf32> to vector<8xf32>
    %61 = vector.shape_cast %60 : vector<8xf32> to vector<8x1xf32>
    %62 = vector.broadcast %61 : vector<8x1xf32> to vector<8x16xf32>
    %63 = arith.subf %58, %62 : vector<8x16xf32>
    %64 = math.exp %63 : vector<8x16xf32>
    %cst_11 = arith.constant dense<0.000000e+00> : vector<8xf32>
    %65 = vector.multi_reduction <add>, %64, %cst_11 [1] : vector<8x16xf32> to vector<8xf32>
    %66 = vector.shape_cast %65 : vector<8xf32> to vector<8x1xf32>
    %67 = tpu.reciprocal %66 {approx = true} : vector<8x1xf32> -> vector<8x1xf32>
    %68 = arith.mulf %66, %67 : vector<8x1xf32>
    %cst_12 = arith.constant 2.000000e+00 : f32
    %69 = vector.broadcast %cst_12 : f32 to vector<8x1xf32>
    %70 = arith.subf %69, %68 : vector<8x1xf32>
    %71 = arith.mulf %67, %70 : vector<8x1xf32>
    %72 = arith.mulf %66, %71 : vector<8x1xf32>
    %cst_13 = arith.constant 2.000000e+00 : f32
    %73 = vector.broadcast %cst_13 : f32 to vector<8x1xf32>
    %74 = arith.subf %73, %72 : vector<8x1xf32>
    %75 = arith.mulf %71, %74 : vector<8x1xf32>
    %76 = vector.broadcast %75 : vector<8x1xf32> to vector<8x16xf32>
    %77 = arith.mulf %64, %76 : vector<8x16xf32>
    %cst_14 = arith.constant dense<0.000000e+00> : vector<8xf32>
    %78 = vector.multi_reduction <add>, %77, %cst_14 [1] : vector<8x16xf32> to vector<8xf32>
    %79 = vector.shape_cast %78 : vector<8xf32> to vector<8x1xf32>
    %cst_15 = arith.constant dense<0.000000e+00> : vector<8x32xf32>
    %80 = tpu.matmul %77, %59, %cst_15 {dimension_numbers = #tpu.dot_dimension_numbers<[1], [1], [0], [0], [0, 0, 1, 0], [], []>, precision = #tpu.contract_precision<fp32>} : vector<8x16xf32>, vector<32x16xf32>, vector<8x32xf32> -> vector<8x32xf32>
    %81 = vector.broadcast %79 : vector<8x1xf32> to vector<8x32xf32>
    %82 = arith.mulf %81, %57 : vector<8x32xf32>
    %83 = arith.subf %80, %82 : vector<8x32xf32>
    %c2 = arith.constant 2 : index
    %c0_16 = arith.constant 0 : index
    %c0_17 = arith.constant 0 : index
    %84 = vector.load %arg3[%c2, %c0_16, %c0_17] : memref<3x8x32xf32, #tpu.memory_space<vmem>>, vector<1x8x32xf32>
    %85 = vector.shape_cast %84 : vector<1x8x32xf32> to vector<8x32xf32>
    %86 = arith.mulf %83, %85 : vector<8x32xf32>
    %87 = vector.shape_cast %86 : vector<8x32xf32> to vector<1x8x32xf32>
    %cst_18 = arith.constant dense<0.000000e+00> : vector<1xf32>
    %88 = vector.multi_reduction <add>, %87, %cst_18 [1, 2] : vector<1x8x32xf32> to vector<1xf32>
    %89 = vector.shape_cast %88 : vector<1xf32> to vector<1x1x1xf32>
    %90 = vector.extract %89[0, 0, 0] : f32 from vector<1x1x1xf32>
    %91 = vector.broadcast %90 : f32 to vector<1x1xf32>
    %92 = vector.extract_strided_slice %55 {offsets = [0, 16], sizes = [8, 16], strides = [1, 1]} : vector<8x32xf32> to vector<8x16xf32>
    %93 = vector.extract_strided_slice %49 {offsets = [0, 16], sizes = [32, 16], strides = [1, 1]} : vector<32x32xf32> to vector<32x16xf32>
    %cst_19 = arith.constant dense<0xFF800000> : vector<8xf32>
    %94 = vector.multi_reduction <maximumf>, %92, %cst_19 [1] : vector<8x16xf32> to vector<8xf32>
    %95 = vector.shape_cast %94 : vector<8xf32> to vector<8x1xf32>
    %96 = vector.broadcast %95 : vector<8x1xf32> to vector<8x16xf32>
    %97 = arith.subf %92, %96 : vector<8x16xf32>
    %98 = math.exp %97 : vector<8x16xf32>
    %cst_20 = arith.constant dense<0.000000e+00> : vector<8xf32>
    %99 = vector.multi_reduction <add>, %98, %cst_20 [1] : vector<8x16xf32> to vector<8xf32>
    %100 = vector.shape_cast %99 : vector<8xf32> to vector<8x1xf32>
    %101 = tpu.reciprocal %100 {approx = true} : vector<8x1xf32> -> vector<8x1xf32>
    %102 = arith.mulf %100, %101 : vector<8x1xf32>
    %cst_21 = arith.constant 2.000000e+00 : f32
    %103 = vector.broadcast %cst_21 : f32 to vector<8x1xf32>
    %104 = arith.subf %103, %102 : vector<8x1xf32>
    %105 = arith.mulf %101, %104 : vector<8x1xf32>
    %106 = arith.mulf %100, %105 : vector<8x1xf32>
    %cst_22 = arith.constant 2.000000e+00 : f32
    %107 = vector.broadcast %cst_22 : f32 to vector<8x1xf32>
    %108 = arith.subf %107, %106 : vector<8x1xf32>
    %109 = arith.mulf %105, %108 : vector<8x1xf32>
    %110 = vector.broadcast %109 : vector<8x1xf32> to vector<8x16xf32>
    %111 = arith.mulf %98, %110 : vector<8x16xf32>
    %cst_23 = arith.constant dense<0.000000e+00> : vector<8xf32>
    %112 = vector.multi_reduction <add>, %111, %cst_23 [1] : vector<8x16xf32> to vector<8xf32>
    %113 = vector.shape_cast %112 : vector<8xf32> to vector<8x1xf32>
    %cst_24 = arith.constant dense<0.000000e+00> : vector<8x32xf32>
    %114 = tpu.matmul %111, %93, %cst_24 {dimension_numbers = #tpu.dot_dimension_numbers<[1], [1], [0], [0], [0, 0, 1, 0], [], []>, precision = #tpu.contract_precision<fp32>} : vector<8x16xf32>, vector<32x16xf32>, vector<8x32xf32> -> vector<8x32xf32>
    %115 = vector.broadcast %113 : vector<8x1xf32> to vector<8x32xf32>
    %116 = arith.mulf %115, %57 : vector<8x32xf32>
    %117 = arith.subf %114, %116 : vector<8x32xf32>
    %c2_25 = arith.constant 2 : index
    %c0_26 = arith.constant 0 : index
    %c0_27 = arith.constant 0 : index
    %118 = vector.load %arg3[%c2_25, %c0_26, %c0_27] : memref<3x8x32xf32, #tpu.memory_space<vmem>>, vector<1x8x32xf32>
    %119 = vector.shape_cast %118 : vector<1x8x32xf32> to vector<8x32xf32>
    %120 = arith.mulf %117, %119 : vector<8x32xf32>
    %121 = vector.shape_cast %120 : vector<8x32xf32> to vector<1x8x32xf32>
    %cst_28 = arith.constant dense<0.000000e+00> : vector<1xf32>
    %122 = vector.multi_reduction <add>, %121, %cst_28 [1, 2] : vector<1x8x32xf32> to vector<1xf32>
    %123 = vector.shape_cast %122 : vector<1xf32> to vector<1x1x1xf32>
    %124 = vector.extract %123[0, 0, 0] : f32 from vector<1x1x1xf32>
    %125 = vector.broadcast %124 : f32 to vector<1x1xf32>
    %126 = tpu.concatenate %91, %125 in 0 : vector<1x1xf32>, vector<1x1xf32> -> vector<2x1xf32>
    %127 = vector.extract_strided_slice %0 {offsets = [0, 4], sizes = [1, 1], strides = [1, 1]} : vector<32x8xf32> to vector<1x1xf32>
    %128 = vector.broadcast %127 : vector<1x1xf32> to vector<2x1xf32>
    %129 = arith.addf %126, %128 : vector<2x1xf32>
    %c0_29 = arith.constant 0 : index
    %c0_30 = arith.constant 0 : index
    %130 = vector.load %arg4[%c0_29, %c0_30] : memref<2x1xf32, #tpu.memory_space<vmem>>, vector<2x1xf32>
    tpu.vector_store %arg4[%c0_29, %c0_30], %129 {strides = array<i32>} : memref<2x1xf32, #tpu.memory_space<vmem>>, vector<2x1xf32>,
    return
  }
  func.func @transform_0(%arg0: i32) -> (i32, i32) {
    %c0_i32 = arith.constant 0 : i32
    %c0_i32_0 = arith.constant 0 : i32
    %c0_i32_1 = arith.constant 0 : i32
    return %c0_i32, %c0_i32_0 : i32, i32
  }
  func.func @transform_1(%arg0: i32) -> (i32, i32) {
    %c0_i32 = arith.constant 0 : i32
    %c0_i32_0 = arith.constant 0 : i32
    %c0_i32_1 = arith.constant 0 : i32
    return %c0_i32, %c0_i32_0 : i32, i32
  }
  func.func @transform_2(%arg0: i32) -> (i32, i32, i32) {
    %c0_i32 = arith.constant 0 : i32
    %c0_i32_0 = arith.constant 0 : i32
    %c0_i32_1 = arith.constant 0 : i32
    %c0_i32_2 = arith.constant 0 : i32
    return %c0_i32, %c0_i32_0, %c0_i32_1 : i32, i32, i32
  }
  func.func @transform_3(%arg0: i32) -> (i32, i32) {
    %c0_i32 = arith.constant 0 : i32
    %c0_i32_0 = arith.constant 0 : i32
    %c0_i32_1 = arith.constant 0 : i32
    return %c0_i32, %c0_i32_0 : i32, i32
  }
}

</mosaic_0001>

<bundles_post_ra>
// kernel: model_forward.1
= control target key start
LH: loop header
LB: loop body
LE: loop exit
PB: predicated region body
PF: predicated region fallthrough
CT: control target
= control target key end

     0   :  { %v3195_v0 = vmov 6   ;;  %v3196_v1 = vmov 5   ;;  %v3197_v5 = vmov 7   ;;  %v3198_v7 = vmov 0   ;;  %s3202_s17 = smov 96   ;;  %s3207_s19 = smov 112   ;;  %s4233_s1 = inlined_call_operand.vmem [shape: f32[32,8], index: 1, kind: input, shape index: {}]   ;;  %s4234_s0 = inlined_call_operand.vmem [shape: f32[3,2048], index: 0, kind: input, shape index: {}]   ;;  %s4235_s2 = inlined_call_operand.vmem [shape: f32[3,8,32], index: 2, kind: input, shape index: {}]   ;;  %s4236_s3 = inlined_call_operand.vmem [shape: f32[2,1], index: 3, kind: output, shape index: {}]  }
   0x1   :  { %3168 = vset.pattern.permute.xlu1 %v3195_v0  ;;  %3167 = vset.pattern.permute.xlu0 %v3196_v1  ;;  %v14_v2 = vld [vmem:[%s4233_s1] sm:$0xff]  ;;  %v15_v3 = vld [vmem:[%s4233_s1 + $0x8] sm:$0xff]  ;;  %v17_v4 = vld [vmem:[%s4233_s1 + $0x18] sm:$0xff]  ;;  %v54_v8 = vlaneseq  ;;  %vm3204_vm0 = vmmov 0   ;;  %vm1622_vm1 = vcmask 130048   ;;  %vm1131_vm2 = vcmask 261120  }
   0x2   :  { %263 = vperm.xlu1 %3168, %v14_v2   ;;  %28 = vperm.xlu0 %3167, %v14_v2   ;;  %v16_v6 = vld [vmem:[%s4233_s1 + $0x10] sm:$0xff]  ;;  %v3250_v12 = vld [vmem:[%s4234_s0] sm:$0x77]  ;;  %v3255_v13 = vld [vmem:[%s4234_s0 + $0x8] sm:$0x77]  ;;  %vm2159_vm3 = vcmask 261248  }
   0x3   :  { %v3241_v9 = vshrl.u32 %v54_v8, 7  ;;  %v3260_v14 = vld [vmem:[%s4234_s0 + $0x10] sm:$0x77]  ;;  %v3265_v15 = vld [vmem:[%s4234_s0 + $0x18] sm:$0x77]  ;;  %s3208_s24 = smov 124  }
   0x4   :  { %v3270_v16 = vld [vmem:[%s4234_s0 + $0x20] sm:$0x77]  ;;  %v3275_v17 = vld [vmem:[%s4234_s0 + $0x28] sm:$0x77]  ;;  %v3280_v18 = vld [vmem:[%s4234_s0 + $0x30] sm:$0x77] }
   0x5   :  { %v3244_v10 = vsub.s32 0, %v3241_v9  ;;  %v60_v11 = vsub.s32 4, %v3241_v9  ;;  %v3286_v21 = vsub.s32 1, %v3241_v9  ;;  %v3289_v22 = vsub.s32 5, %v3241_v9  ;;  %v3294_v23 = vld [vmem:[%s4234_s0 + $0x38] sm:$0x77] }
   0x6   :  { %267 = vperm.xlu1 %3168, %v15_v3   ;;  %33 = vperm.xlu0 %3167, %v15_v3   ;;  %v3357_v51 = vsub.s32 2, %v3241_v9  ;;  %s3199_s0 = smov 64   ;;  %vm2705_vm4 = vcmask 1040384   ;;  %vm2716_vm5 = vcmask 1024  }
   0x7   :  { %4346 = vst [vmem:[#allocation2_spill] sm:$0xff] %v3244_v10  ;;  %v57_v19 = vrot.slane %v3250_v12, %v3244_v10  ;;  %v61_v20 = vrot.slane %v3250_v12, %v60_v11  ;;  %v65_v24 = vrot.slane %v3255_v13, %v3244_v10  ;;  %v69_v25 = vrot.slane %v3255_v13, %v60_v11 }
   0x8   :  { %v73_v26 = vrot.slane %v3260_v14, %v3244_v10  ;;  %v77_v27 = vrot.slane %v3260_v14, %v60_v11  ;;  %v81_v28 = vrot.slane %v3265_v15, %v3244_v10  ;;  %v85_v29 = vrot.slane %v3265_v15, %v60_v11 }
   0x9   :  { %v89_v30 = vrot.slane %v3270_v16, %v3244_v10  ;;  %v93_v31 = vrot.slane %v3270_v16, %v60_v11  ;;  %v97_v32 = vrot.slane %v3275_v17, %v3244_v10  ;;  %v101_v33 = vrot.slane %v3275_v17, %v60_v11 }
   0xa   :  { %3169 = vset.pattern.permute.xlu1 %v3197_v5  ;;  %43 = vperm.xlu0 %3167, %v17_v4   ;;  %v105_v34 = vrot.slane %v3280_v18, %v3244_v10  ;;  %v109_v35 = vrot.slane %v3280_v18, %v60_v11  ;;  %v113_v36 = vrot.slane %v3294_v23, %v3244_v10 }
   0xb   :  { %555 = vperm.xlu1 %3169, %v15_v3   ;;  %v117_v37 = vrot.slane %v3294_v23, %v60_v11  ;;  %v3318_v38 = vrot.slane %v57_v19, %v3244_v10  ;;  %v3321_v39 = vrot.slane %v61_v20, %v3244_v10  ;;  %v3324_v40 = vrot.slane %v65_v24, %v3244_v10 }
   0xc   :  { %v3327_v41 = vrot.slane %v69_v25, %v3244_v10  ;;  %v3330_v42 = vrot.slane %v73_v26, %v3244_v10  ;;  %v3333_v43 = vrot.slane %v77_v27, %v3244_v10  ;;  %v3336_v44 = vrot.slane %v81_v28, %v3244_v10 }
   0xd   :  { %4347 = vst [vmem:[#allocation3_spill] sm:$0xff] %v3318_v38  ;;  %4348 = vst [vmem:[#allocation4_spill] sm:$0xff] %v3321_v39  ;;  %v3339_v45 = vrot.slane %v85_v29, %v3244_v10  ;;  %v3342_v46 = vrot.slane %v89_v30, %v3244_v10  ;;  %v3345_v47 = vrot.slane %v93_v31, %v3244_v10  ;;  %v572_v20 = vsub.s32 6, %v3241_v9 }
   0xe   :  { %3171 = vset.pattern.permute.xlu0 %v3197_v5  ;;  %4349 = vst [vmem:[#allocation5_spill] sm:$0xff] %v3324_v40  ;;  %4350 = vst [vmem:[#allocation6_spill] sm:$0xff] %v3327_v41  ;;  %v3348_v48 = vrot.slane %v97_v32, %v3244_v10  ;;  %v3351_v49 = vrot.slane %v101_v33, %v3244_v10  ;;  %v3354_v50 = vrot.slane %v105_v34, %v3244_v10 }
   0xf   :  { %3170 = vset.pattern.permute.xlu1 %v3196_v1  ;;  %551 = vperm.xlu0 %3171, %v14_v2   ;;  %4351 = vst [vmem:[#allocation7_spill] sm:$0xff] %v3330_v42  ;;  %4352 = vst [vmem:[#allocation8_spill] sm:$0xff] %v3333_v43  ;;  %v3360_v52 = vrot.slane %v109_v35, %v3244_v10  ;;  %v3363_v53 = vrot.slane %v113_v36, %v3244_v10 }
  0x10   :  { %38 = vperm.xlu1 %3170, %v16_v6   ;;  %4353 = vst [vmem:[#allocation9_spill] sm:$0xff] %v3336_v44  ;;  %4354 = vst [vmem:[#allocation10_spill] sm:$0xff] %v3339_v45  ;;  %v3366_v54 = vrot.slane %v117_v37, %v3244_v10  ;;  %v281_v55 = vrot.slane %v3250_v12, %v3286_v21  ;;  %v285_v56 = vrot.slane %v3250_v12, %v3289_v22 }
  0x11   :  { %4355 = vst [vmem:[#allocation11_spill] sm:$0xff] %v3342_v46  ;;  %4356 = vst [vmem:[#allocation12_spill] sm:$0xff] %v3345_v47  ;;  %v289_v57 = vrot.slane %v3255_v13, %v3286_v21  ;;  %v293_v58 = vrot.slane %v3255_v13, %v3289_v22  ;;  %v297_v59 = vrot.slane %v3260_v14, %v3286_v21 }
  0x12   :  { %4357 = vst [vmem:[#allocation13_spill] sm:$0xff] %v3348_v48  ;;  %4358 = vst [vmem:[#allocation14_spill] sm:$0xff] %v3351_v49  ;;  %v301_v60 = vrot.slane %v3260_v14, %v3289_v22  ;;  %v305_v61 = vrot.slane %v3265_v15, %v3286_v21  ;;  %v309_v62 = vrot.slane %v3265_v15, %v3289_v22 }
  0x13   :  { %559 = vperm.xlu0 %3171, %v16_v6   ;;  %4359 = vst [vmem:[#allocation15_spill] sm:$0xff] %v3354_v50  ;;  %4360 = vst [vmem:[#allocation16_spill] sm:$0xff] %v3360_v52  ;;  %v313_v63 = vrot.slane %v3270_v16, %v3286_v21  ;;  %v321_v1 = vrot.slane %v3275_v17, %v3286_v21  ;;  %v3404_v8 = vrot.slane %v285_v56, %v3286_v21 }
  0x14   :  { %3172 = vset.pattern.permute.xlu1 %v3195_v0  ;;  %4361 = vst [vmem:[#allocation17_spill] sm:$0xff] %v3363_v53  ;;  %4362 = vst [vmem:[#allocation18_spill] sm:$0xff] %v3366_v54  ;;  %v317_v0 = vrot.slane %v3270_v16, %v3289_v22  ;;  %v3407_v11 = vrot.slane %v289_v57, %v3286_v21  ;;  %v3410_v19 = vrot.slane %v293_v58, %v3286_v21 }
  0x15   :  { %271 = vperm.xlu1 %3172, %v16_v6   ;;  %4364 = vst [vmem:[#allocation20_spill] sm:$0xff] %v3404_v8  ;;  %v3414_v24 = vrot.slane %v297_v59, %v3286_v21  ;;  %v3417_v25 = vrot.slane %v301_v60, %v3286_v21  ;;  %v3423_v26 = vrot.slane %v309_v62, %v3286_v21 }
  0x16   :  { %4365 = vst [vmem:[#allocation21_spill] sm:$0xff] %v3407_v11  ;;  %4366 = vst [vmem:[#allocation22_spill] sm:$0xff] %v3410_v19  ;;  %v3426_v27 = vrot.slane %v313_v63, %v3286_v21  ;;  %v3429_v28 = vrot.slane %v317_v0, %v3286_v21  ;;  %v3432_v9 = vrot.slane %v321_v1, %v3286_v21 }
  0x17   :  { %3175 = vset.pattern.permute.xlu0 %v3198_v7  ;;  %4367 = vst [vmem:[#allocation23_spill] sm:$0xff] %v3414_v24  ;;  %4368 = vst [vmem:[#allocation24_spill] sm:$0xff] %v3417_v25  ;;  %v569_v34 = vrot.slane %v3250_v12, %v3357_v51  ;;  %v573_v35 = vrot.slane %v3250_v12, %v572_v20  ;;  %v577_v36 = vrot.slane %v3255_v13, %v3357_v51 }
  0x18   :  { %843 = vperm.xlu0 %3175, %v15_v3   ;;  %v329_v3 = vrot.slane %v3280_v18, %v3286_v21  ;;  %4370 = vst [vmem:[#allocation26_spill] sm:$0xff] %v3423_v26  ;;  %4371 = vst [vmem:[#allocation27_spill] sm:$0xff] %v3426_v27  ;;  %v581_v37 = vrot.slane %v3255_v13, %v572_v20  ;;  %v589_v56 = vrot.slane %v3260_v14, %v572_v20 }
  0x19   :  { %275 = vperm.xlu1 %3172, %v17_v4   ;;  %4372 = vst [vmem:[#allocation28_spill] sm:$0xff] %v3429_v28  ;;  %4373 = vst [vmem:[#allocation29_spill] sm:$0xff] %v3432_v9  ;;  %v593_v57 = vrot.slane %v3265_v15, %v3357_v51  ;;  %v601_v58 = vrot.slane %v3270_v16, %v3357_v51  ;;  %v605_v12 = vrot.slane %v3270_v16, %v572_v20 }
  0x1a   :  { %v3438_v30 = vrot.slane %v329_v3, %v3286_v21  ;;  %v609_v59 = vrot.slane %v3275_v17, %v3357_v51  ;;  %v613_v13 = vrot.slane %v3275_v17, %v572_v20  ;;  %v617_v60 = vrot.slane %v3280_v18, %v3357_v51 }
  0x1b   :  { %v3474_v62 = vrot.slane %v569_v34, %v3357_v51  ;;  %v3477_v16 = vrot.slane %v573_v35, %v3357_v51  ;;  %v3480_v63 = vrot.slane %v577_v36, %v3357_v51  ;;  %v3501_v3 = vrot.slane %v605_v12, %v3357_v51 }
  0x1c   :  { %4375 = vst [vmem:[#allocation31_spill] sm:$0xff] %v3438_v30  ;;  %v3512_v34 = vrot.slane %v617_v60, %v3357_v51 }
  0x1d   :  { %3173 = vset.pattern.permute.xlu1 %v3197_v5  ;;  %v337_v5 = vrot.slane %v3294_v23, %v3286_v21  ;;  %4379 = vst [vmem:[#allocation35_spill] sm:$0xff] %v3474_v62  ;;  %4380 = vst [vmem:[#allocation36_spill] sm:$0xff] %v3477_v16 }
  0x1e   :  { %563 = vperm.xlu1 %3173, %v17_v4   ;;  %4381 = vst [vmem:[#allocation37_spill] sm:$0xff] %v3480_v63  ;;  %4388 = vst [vmem:[#allocation44_spill] sm:$0xff] %v3501_v3 }
  0x1f   :  { %v3444_v32 = vrot.slane %v337_v5, %v3286_v21  ;;  %v3507_v5 = vrot.slane %v613_v13, %v3357_v51  ;;  %4392 = vst [vmem:[#allocation48_spill] sm:$0xff] %v3512_v34 }
  0x21   :  { %4377 = vst [vmem:[#allocation33_spill] sm:$0xff] %v3444_v32  ;;  %4390 = vst [vmem:[#allocation46_spill] sm:$0xff] %v3507_v5 }
  0x22   :  { %3174 = vset.pattern.permute.xlu1 %v3198_v7  ;;  %v3401_v7 = vrot.slane %v281_v55, %v3286_v21  ;;  %v585_v55 = vrot.slane %v3260_v14, %v3357_v51  ;;  %v621_v14 = vrot.slane %v3280_v18, %v572_v20 }
  0x23   :  { %839 = vperm.xlu1 %3174, %v14_v2   ;;  %v325_v2 = vrot.slane %v3275_v17, %v3289_v22  ;;  %v3483_v17 = vrot.slane %v581_v37, %v3357_v51 }
  0x24   :  { %4363 = vst [vmem:[#allocation19_spill] sm:$0xff] %v3401_v7  ;;  %v3486_v0 = vrot.slane %v585_v55, %v3357_v51  ;;  %v3515_v35 = vrot.slane %v621_v14, %v3357_v51 }
  0x25   :  { %v3435_v29 = vrot.slane %v325_v2, %v3286_v21  ;;  %4382 = vst [vmem:[#allocation38_spill] sm:$0xff] %v3483_v17  ;;  %v3498_v2 = vrot.slane %v601_v58, %v3357_v51 }
  0x26   :  { %4383 = vst [vmem:[#allocation39_spill] sm:$0xff] %v3486_v0  ;;  %4393 = vst [vmem:[#allocation49_spill] sm:$0xff] %v3515_v35 }
  0x27   :  { %847 = vperm.xlu1 %3174, %v16_v6   ;;  %v341_v6 = vrot.slane %v3294_v23, %v3289_v22  ;;  %4374 = vst [vmem:[#allocation30_spill] sm:$0xff] %v3435_v29  ;;  %4387 = vst [vmem:[#allocation43_spill] sm:$0xff] %v3498_v2 }
  0x29   :  { %v3447_v33 = vrot.slane %v341_v6, %v3286_v21 }
  0x2b   :  { %851 = vperm.xlu1 %3174, %v17_v4   ;;  %v333_v4 = vrot.slane %v3280_v18, %v3289_v22  ;;  %v3420_v22 = vrot.slane %v305_v61, %v3286_v21  ;;  %4378 = vst [vmem:[#allocation34_spill] sm:$0xff] %v3447_v33  ;;  %v625_v61 = vrot.slane %v3294_v23, %v3357_v51 }
  0x2c   :  { %v3489_v18 = vrot.slane %v589_v56, %v3357_v51 }
  0x2d   :  { %4369 = vst [vmem:[#allocation25_spill] sm:$0xff] %v3420_v22  ;;  %v3441_v31 = vrot.slane %v333_v4, %v3286_v21  ;;  %v597_v21 = vrot.slane %v3265_v15, %v572_v20  ;;  %v629_v15 = vrot.slane %v3294_v23, %v572_v20  ;;  %v3492_v23 = vrot.slane %v593_v57, %v3357_v51 }
  0x2e   :  { %4384 = vst [vmem:[#allocation40_spill] sm:$0xff] %v3489_v18  ;;  %v3504_v4 = vrot.slane %v609_v59, %v3357_v51  ;;  %v3518_v36 = vrot.slane %v625_v61, %v3357_v51 }
  0x2f   :  { %4376 = vst [vmem:[#allocation32_spill] sm:$0xff] %v3441_v31  ;;  %4385 = vst [vmem:[#allocation41_spill] sm:$0xff] %v3492_v23  ;;  %v3495_v1 = vrot.slane %v597_v21, %v3357_v51  ;;  %v3521_v37 = vrot.slane %v629_v15, %v3357_v51 }
  0x30   :  { %4389 = vst [vmem:[#allocation45_spill] sm:$0xff] %v3504_v4  ;;  %4394 = vst [vmem:[#allocation50_spill] sm:$0xff] %v3518_v36 }
  0x31   :  { %4386 = vst [vmem:[#allocation42_spill] sm:$0xff] %v3495_v1  ;;  %4395 = vst [vmem:[#allocation51_spill] sm:$0xff] %v3521_v37 }
  0x81   :  { %v3509_v6 = vpop.permute.xlu1 %263  ;;  %v29_v20 = vpop.permute.xlu0 %28 }
  0x82   :  { %4391 = vst [vmem:[#allocation47_spill] sm:$0xff] %v3509_v6  ;;  %v3524_v55 = vmul.f32 %v3318_v38, %v29_v20  ;;  %v3527_v56 = vmul.f32 %v3321_v39, %v29_v20  ;;  %v3530_v57 = vmul.f32 %v3324_v40, %v29_v20  ;;  %v3533_v21 = vmul.f32 %v3327_v41, %v29_v20 }
  0x83   :  { %v3536_v58 = vmul.f32 %v3330_v42, %v29_v20  ;;  %v3539_v12 = vmul.f32 %v3333_v43, %v29_v20  ;;  %v3542_v51 = vmul.f32 %v3336_v44, %v29_v20  ;;  %v3545_v59 = vmul.f32 %v3339_v45, %v29_v20 }
  0x84   :  { %4396 = vst [vmem:[#allocation52_spill] sm:$0xff] %v3524_v55  ;;  %4397 = vst [vmem:[#allocation53_spill] sm:$0xff] %v3527_v56  ;;  %v3548_v13 = vmul.f32 %v3342_v46, %v29_v20  ;;  %v3551_v60 = vmul.f32 %v3345_v47, %v29_v20  ;;  %v3554_v14 = vmul.f32 %v3348_v48, %v29_v20 }
  0x85   :  { %4398 = vst [vmem:[#allocation54_spill] sm:$0xff] %v3530_v57  ;;  %4399 = vst [vmem:[#allocation55_spill] sm:$0xff] %v3533_v21  ;;  %v3557_v61 = vmul.f32 %v3351_v49, %v29_v20  ;;  %v34_v15 = vpop.permute.xlu0 %33  ;;  %v3560_v10 = vmul.f32 %v3354_v50, %v29_v20 }
  0x86   :  { %4400 = vst [vmem:[#allocation56_spill] sm:$0xff] %v3536_v58  ;;  %4401 = vst [vmem:[#allocation57_spill] sm:$0xff] %v3539_v12  ;;  %v216_v12 = vmul.f32 %v3324_v40, %v34_v15  ;;  %v268_v58 = vpop.permute.xlu1 %267  ;;  %v219_v21 = vmul.f32 %v3333_v43, %v34_v15  ;;  %v228_v43 = vmul.f32 %v3363_v53, %v34_v15 }
  0x87   :  { %4402 = vst [vmem:[#allocation58_spill] sm:$0xff] %v3542_v51  ;;  %4403 = vst [vmem:[#allocation59_spill] sm:$0xff] %v3545_v59  ;;  %v3563_v51 = vmul.f32 %v3360_v52, %v29_v20  ;;  %v3566_v59 = vmul.f32 %v3363_v53, %v29_v20  ;;  %v446_v53 = vmul.f32 %v3426_v27, %v268_v58 }
  0x88   :  { %4404 = vst [vmem:[#allocation60_spill] sm:$0xff] %v3548_v13  ;;  %4405 = vst [vmem:[#allocation61_spill] sm:$0xff] %v3551_v60  ;;  %v3569_v13 = vmul.f32 %v3366_v54, %v29_v20  ;;  %v214_v60 = vmul.f32 %v3318_v38, %v34_v15  ;;  %v222_v20 = vmul.f32 %v3342_v46, %v34_v15 }
  0x89   :  { %4406 = vst [vmem:[#allocation62_spill] sm:$0xff] %v3554_v14  ;;  %4407 = vst [vmem:[#allocation63_spill] sm:$0xff] %v3557_v61  ;;  %v215_v14 = vmul.f32 %v3321_v39, %v34_v15  ;;  %v217_v61 = vmul.f32 %v3327_v41, %v34_v15  ;;  %v224_v38 = vmul.f32 %v3348_v48, %v34_v15  ;;  %v3583_v40 = vpop.permute.xlu0 %43 }
  0x8a   :  { %4408 = vst [vmem:[#allocation64_spill] sm:$0xff] %v3560_v10  ;;  %4409 = vst [vmem:[#allocation65_spill] sm:$0xff] %v3563_v51  ;;  %v218_v10 = vmul.f32 %v3330_v42, %v34_v15  ;;  %v220_v51 = vmul.f32 %v3336_v44, %v34_v15  ;;  %v225_v39 = vmul.f32 %v3351_v49, %v34_v15 }
  0x8b   :  { %4410 = vst [vmem:[#allocation66_spill] sm:$0xff] %v3566_v59  ;;  %4411 = vst [vmem:[#allocation67_spill] sm:$0xff] %v3569_v13  ;;  %v221_v59 = vmul.f32 %v3339_v45, %v34_v15  ;;  %v223_v13 = vmul.f32 %v3345_v47, %v34_v15  ;;  %v226_v41 = vmul.f32 %v3354_v50, %v34_v15 }
  0x8c   :  { %4412 = vst [vmem:[#allocation68_spill] sm:$0xff] %v3583_v40  ;;  %v227_v42 = vmul.f32 %v3360_v52, %v34_v15  ;;  %v229_v44 = vmul.f32 %v3366_v54, %v34_v15  ;;  %v438_v45 = vmul.f32 %v3401_v7, %v268_v58  ;;  %v439_v46 = vmul.f32 %v3404_v8, %v268_v58  ;;  %v556_v8 = vpop.permute.xlu1 %555 }
  0x8d   :  { %v440_v47 = vmul.f32 %v3407_v11, %v268_v58  ;;  %v441_v48 = vmul.f32 %v3410_v19, %v268_v58  ;;  %v442_v49 = vmul.f32 %v3414_v24, %v268_v58  ;;  %v443_v40 = vmul.f32 %v3417_v25, %v268_v58 }
  0x8e   :  { %v444_v50 = vmul.f32 %v3420_v22, %v268_v58  ;;  %v445_v52 = vmul.f32 %v3423_v26, %v268_v58  ;;  %v447_v15 = vmul.f32 %v3429_v28, %v268_v58  ;;  %v448_v54 = vmul.f32 %v3432_v9, %v268_v58  ;;  %v3605_v19 = vpop.permute.xlu0 %551 }
  0x8f   :  { %v449_v57 = vmul.f32 %v3435_v29, %v268_v58  ;;  %v450_v56 = vmul.f32 %v3438_v30, %v268_v58  ;;  %v451_v55 = vmul.f32 %v3441_v31, %v268_v58  ;;  %v452_v24 = vmul.f32 %v3444_v32, %v268_v58 }
  0x90   :  { %v453_v25 = vmul.f32 %v3447_v33, %v268_v58  ;;  %v502_v22 = vadd.f32 %v438_v45, %v214_v60  ;;  %v503_v26 = vadd.f32 %v439_v46, %v215_v14  ;;  %v504_v11 = vadd.f32 %v440_v47, %v216_v12 }
  0x91   :  { %v505_v27 = vadd.f32 %v441_v48, %v217_v61  ;;  %v506_v28 = vadd.f32 %v442_v49, %v218_v10  ;;  %v507_v7 = vadd.f32 %v443_v40, %v219_v21  ;;  %v508_v9 = vadd.f32 %v444_v50, %v220_v51  ;;  %v4414_v49 = vld [vmem:[#allocation48_spill] sm:$0xff] }
  0x92   :  { %v509_v6 = vadd.f32 %v445_v52, %v221_v59  ;;  %v510_v29 = vadd.f32 %v446_v53, %v222_v20  ;;  %v511_v37 = vadd.f32 %v447_v15, %v223_v13  ;;  %v512_v30 = vadd.f32 %v448_v54, %v224_v38  ;;  %v3607_v58 = vpop.permute.xlu0 %559  ;;  %v4415_v52 = vld [vmem:[#allocation49_spill] sm:$0xff]  ;;  %v4416_v54 = vld [vmem:[#allocation50_spill] sm:$0xff] }
  0x93   :  { %v513_v36 = vadd.f32 %v449_v57, %v225_v39  ;;  %v514_v31 = vadd.f32 %v450_v56, %v226_v41  ;;  %v515_v35 = vadd.f32 %v451_v55, %v227_v42  ;;  %v516_v32 = vadd.f32 %v452_v24, %v228_v43  ;;  %4413 = vst [vmem:[#allocation69_spill] sm:$0xff] %v3607_v58 }
  0x94   :  { %v517_v34 = vadd.f32 %v453_v25, %v229_v44  ;;  %v726_v45 = vmul.f32 %v3474_v62, %v556_v8  ;;  %v727_v46 = vmul.f32 %v3477_v16, %v556_v8  ;;  %v728_v47 = vmul.f32 %v3480_v63, %v556_v8  ;;  %v4417_v25 = vld [vmem:[#allocation51_spill] sm:$0xff] }
  0x95   :  { %v729_v10 = vmul.f32 %v3483_v17, %v556_v8  ;;  %v730_v40 = vmul.f32 %v3486_v0, %v556_v8  ;;  %v731_v48 = vmul.f32 %v3489_v18, %v556_v8  ;;  %v732_v38 = vmul.f32 %v3492_v23, %v556_v8 }
  0x96   :  { %v733_v39 = vmul.f32 %v3495_v1, %v556_v8  ;;  %v734_v41 = vmul.f32 %v3498_v2, %v556_v8  ;;  %v735_v42 = vmul.f32 %v3501_v3, %v556_v8  ;;  %v736_v43 = vmul.f32 %v3504_v4, %v556_v8 }
  0x97   :  { %v737_v44 = vmul.f32 %v3507_v5, %v556_v8  ;;  %v738_v50 = vmul.f32 %v4414_v49, %v556_v8  ;;  %v739_v53 = vmul.f32 %v4415_v52, %v556_v8  ;;  %v740_v24 = vmul.f32 %v4416_v54, %v556_v8  ;;  %v844_v51 = vpop.permute.xlu0 %843  ;;  %v3625_v54 = vpop.permute.xlu1 %38 }
  0x98   :  { %v741_v55 = vmul.f32 %v4417_v25, %v556_v8  ;;  %v790_v56 = vadd.f32 %v726_v45, %v502_v22  ;;  %v791_v57 = vadd.f32 %v727_v46, %v503_v26  ;;  %v792_v21 = vadd.f32 %v728_v47, %v504_v11 }
  0x99   :  { %v793_v12 = vadd.f32 %v729_v10, %v505_v27  ;;  %v794_v59 = vadd.f32 %v730_v40, %v506_v28  ;;  %v795_v13 = vadd.f32 %v731_v48, %v507_v7  ;;  %v796_v60 = vadd.f32 %v732_v38, %v508_v9 }
  0x9a   :  { %v797_v14 = vadd.f32 %v733_v39, %v509_v6  ;;  %v798_v61 = vadd.f32 %v734_v41, %v510_v29  ;;  %v799_v20 = vadd.f32 %v735_v42, %v511_v37  ;;  %v800_v15 = vadd.f32 %v736_v43, %v512_v30 }
  0x9b   :  { %v801_v58 = vadd.f32 %v737_v44, %v513_v36  ;;  %v802_v49 = vadd.f32 %v738_v50, %v514_v31  ;;  %v803_v5 = vadd.f32 %v739_v53, %v515_v35  ;;  %v804_v52 = vadd.f32 %v740_v24, %v516_v32  ;;  %v3627_v39 = vpop.permute.xlu1 %271 }
  0x9c   :  { %v805_v4 = vadd.f32 %v741_v55, %v517_v34  ;;  %v870_v8 = vadd.f32 %v844_v51, %v790_v56  ;;  %v871_v22 = vadd.f32 %v844_v51, %v791_v57  ;;  %v872_v26 = vadd.f32 %v844_v51, %v792_v21 }
  0x9d   :  { %v873_v11 = vadd.f32 %v844_v51, %v793_v12  ;;  %v874_v27 = vadd.f32 %v844_v51, %v794_v59  ;;  %v875_v45 = vadd.f32 %v844_v51, %v795_v13  ;;  %v876_v28 = vadd.f32 %v844_v51, %v796_v60  ;;  %v4418_v12 = vld [vmem:[#allocation47_spill] sm:$0xff]  ;;  %v4420_v13 = vld [vmem:[#allocation20_spill] sm:$0xff] }
  0x9e   :  { %v877_v7 = vadd.f32 %v844_v51, %v797_v14  ;;  %v878_v9 = vadd.f32 %v844_v51, %v798_v61  ;;  %v879_v6 = vadd.f32 %v844_v51, %v799_v20  ;;  %v880_v29 = vadd.f32 %v844_v51, %v800_v15  ;;  %v4421_v14 = vld [vmem:[#allocation21_spill] sm:$0xff]  ;;  %v4422_v20 = vld [vmem:[#allocation22_spill] sm:$0xff] }
  0x9f   :  { %v881_v37 = vadd.f32 %v844_v51, %v801_v58  ;;  %v882_v30 = vadd.f32 %v844_v51, %v802_v49  ;;  %v883_v36 = vadd.f32 %v844_v51, %v803_v5  ;;  %v884_v31 = vadd.f32 %v844_v51, %v804_v52 }
  0xa0   :  { %v885_v35 = vadd.f32 %v844_v51, %v805_v4  ;;  %v934_v32 = vmax.f32 %v870_v8, 0.0  ;;  %v935_v34 = vmax.f32 %v871_v22, 0.0  ;;  %v936_v46 = vmax.f32 %v872_v26, 0.0  ;;  %v4419_v51 = vld [vmem:[#allocation19_spill] sm:$0xff] }
  0xa1   :  { %v937_v47 = vmax.f32 %v873_v11, 0.0  ;;  %v938_v10 = vmax.f32 %v874_v27, 0.0  ;;  %v939_v40 = vmax.f32 %v875_v45, 0.0  ;;  %v940_v48 = vmax.f32 %v876_v28, 0.0  ;;  %v3637_v27 = vpop.permute.xlu1 %275  ;;  %v4424_v45 = vld [vmem:[#allocation23_spill] sm:$0xff] }
  0xa2   :  { %v941_v38 = vmax.f32 %v877_v7, 0.0  ;;  %v942_v41 = vmax.f32 %v878_v9, 0.0  ;;  %v943_v42 = vmax.f32 %v879_v6, 0.0  ;;  %v944_v43 = vmax.f32 %v880_v29, 0.0  ;;  %4423 = vst [vmem:[#allocation51_spill] sm:$0xff] %v3637_v27  ;;  %v4425_v7 = vld [vmem:[#allocation24_spill] sm:$0xff] }
  0xa3   :  { %v945_v44 = vmax.f32 %v881_v37, 0.0  ;;  %v946_v50 = vmax.f32 %v882_v30, 0.0  ;;  %v947_v58 = vmax.f32 %v883_v36, 0.0  ;;  %v948_v49 = vmax.f32 %v884_v31, 0.0  ;;  %v4426_v6 = vld [vmem:[#allocation25_spill] sm:$0xff]  ;;  %v4427_v37 = vld [vmem:[#allocation26_spill] sm:$0xff] }
  0xa4   :  { %v949_v5 = vmax.f32 %v885_v35, 0.0  ;;  %v990_v52 = vadd.f32 %v942_v41, %v934_v32  ;;  %v991_v4 = vadd.f32 %v943_v42, %v935_v34  ;;  %v992_v53 = vadd.f32 %v944_v43, %v936_v46  ;;  %v4428_v35 = vld [vmem:[#allocation27_spill] sm:$0xff]  ;;  %v4429_v34 = vld [vmem:[#allocation28_spill] sm:$0xff] }
  0xa5   :  { %v993_v24 = vadd.f32 %v945_v44, %v937_v47  ;;  %v994_v55 = vadd.f32 %v946_v50, %v938_v10  ;;  %v995_v56 = vadd.f32 %v947_v58, %v939_v40  ;;  %v996_v57 = vadd.f32 %v948_v49, %v940_v48  ;;  %v4430_v47 = vld [vmem:[#allocation29_spill] sm:$0xff]  ;;  %v4431_v40 = vld [vmem:[#allocation30_spill] sm:$0xff]  ;;  %v4433_v42 = vld [vmem:[#allocation32_spill] sm:$0xff] }
  0xa6   :  { %v997_v21 = vadd.f32 %v949_v5, %v941_v38  ;;  %v422_v59 = vmul.f32 %v4419_v51, %v4418_v12  ;;  %v423_v60 = vmul.f32 %v4420_v13, %v4418_v12  ;;  %v424_v61 = vmul.f32 %v4421_v14, %v4418_v12  ;;  %v4432_v38 = vld [vmem:[#allocation31_spill] sm:$0xff]  ;;  %v4435_v50 = vld [vmem:[#allocation33_spill] sm:$0xff]  ;;  %v4436_v5 = vld [vmem:[#allocation52_spill] sm:$0xff] }
  0xa7   :  { %v425_v15 = vmul.f32 %v4422_v20, %v4418_v12  ;;  %v1018_v8 = vadd.f32 %v994_v55, %v990_v52  ;;  %v1019_v22 = vadd.f32 %v995_v56, %v991_v4  ;;  %v1020_v26 = vadd.f32 %v996_v57, %v992_v53  ;;  %v4437_v4 = vld [vmem:[#allocation53_spill] sm:$0xff]  ;;  %v4439_v56 = vld [vmem:[#allocation55_spill] sm:$0xff]  ;;  %v4444_v27 = vld [vmem:[#allocation60_spill] sm:$0xff] }
  0xa8   :  { %v1021_v11 = vadd.f32 %v997_v21, %v993_v24  ;;  %v426_v28 = vmul.f32 %v4424_v45, %v4418_v12  ;;  %v427_v9 = vmul.f32 %v4425_v7, %v4418_v12  ;;  %v428_v29 = vmul.f32 %v4426_v6, %v4418_v12  ;;  %v4438_v24 = vld [vmem:[#allocation54_spill] sm:$0xff]  ;;  %v4440_v21 = vld [vmem:[#allocation56_spill] sm:$0xff] }
  0xa9   :  { %v429_v30 = vmul.f32 %v4427_v37, %v4418_v12  ;;  %v1032_v36 = vadd.f32 %v1020_v26, %v1018_v8  ;;  %v430_v32 = vmul.f32 %v4428_v35, %v4418_v12  ;;  %v431_v46 = vmul.f32 %v4429_v34, %v4418_v12 }
  0xaa   :  { %v1033_v31 = vadd.f32 %v1021_v11, %v1019_v22  ;;  %v432_v10 = vmul.f32 %v4430_v47, %v4418_v12  ;;  %v433_v48 = vmul.f32 %v4431_v40, %v4418_v12  ;;  %v434_v41 = vmul.f32 %v4432_v38, %v4418_v12  ;;  %v4441_v22 = vld [vmem:[#allocation57_spill] sm:$0xff]  ;;  %v4442_v11 = vld [vmem:[#allocation58_spill] sm:$0xff] }
  0xab   :  { %v435_v43 = vmul.f32 %v4433_v42, %v4418_v12  ;;  %v436_v58 = vmul.f32 %v4435_v50, %v4418_v12  ;;  %v437_v49 = vmul.f32 %v3447_v33, %v4418_v12  ;;  %v486_v52 = vadd.f32 %v422_v59, %v4436_v5  ;;  %v3676_v5 = vpop.permute.xlu1 %563  ;;  %v4450_v33 = vld [vmem:[#allocation65_spill] sm:$0xff]  ;;  %v4451_v50 = vld [vmem:[#allocation66_spill] sm:$0xff] }
  0xac   :  { %v3659_v44 = vadd.f32 %v1033_v31, %v1032_v36  ;;  %v487_v53 = vadd.f32 %v423_v60, %v4437_v4  ;;  %v488_v55 = vadd.f32 %v424_v61, %v4438_v24  ;;  %v489_v57 = vadd.f32 %v425_v15, %v4439_v56  ;;  %v4443_v31 = vld [vmem:[#allocation59_spill] sm:$0xff]  ;;  %4445 = vst [vmem:[#allocation52_spill] sm:$0xff] %v3676_v5  ;;  %v4446_v60 = vld [vmem:[#allocation61_spill] sm:$0xff]  ;;  %v4447_v4 = vld [vmem:[#allocation62_spill] sm:$0xff] }
  0xad   :  { %v490_v8 = vadd.f32 %v426_v28, %v4440_v21  ;;  %v491_v26 = vadd.f32 %v427_v9, %v4441_v22  ;;  %v492_v36 = vadd.f32 %v428_v29, %v4442_v11  ;;  %v493_v12 = vadd.f32 %v429_v30, %v4443_v31  ;;  %v4448_v24 = vld [vmem:[#allocation63_spill] sm:$0xff]  ;;  %v4449_v56 = vld [vmem:[#allocation64_spill] sm:$0xff]  ;;  %v4454_v11 = vld [vmem:[#allocation46_spill] sm:$0xff] }
  0xae   :  { %4434 = vst [vmem:[#allocation47_spill] sm:$0xff] %v3659_v44  ;;  %1048 = vrot.lane.b32.xlu1 %v3659_v44, %s3199_s0  ;;  %v494_v59 = vadd.f32 %v430_v32, %v4444_v27  ;;  %v495_v61 = vadd.f32 %v431_v46, %v4446_v60  ;;  %v496_v15 = vadd.f32 %v432_v10, %v4447_v4  ;;  %v4452_v22 = vld [vmem:[#allocation67_spill] sm:$0xff]  ;;  %v4455_v60 = vld [vmem:[#allocation48_spill] sm:$0xff] }
  0xaf   :  { %v497_v28 = vadd.f32 %v433_v48, %v4448_v24  ;;  %v498_v21 = vadd.f32 %v434_v41, %v4449_v56  ;;  %v499_v44 = vadd.f32 %v435_v43, %v4450_v33  ;;  %v500_v9 = vadd.f32 %v436_v58, %v4451_v50  ;;  %v4453_v58 = vld [vmem:[#allocation45_spill] sm:$0xff] }
  0xb0   :  { %v501_v29 = vadd.f32 %v437_v49, %v4452_v22  ;;  %v710_v30 = vmul.f32 %v3474_v62, %v3605_v19  ;;  %v711_v27 = vmul.f32 %v3477_v16, %v3605_v19  ;;  %v712_v32 = vmul.f32 %v3480_v63, %v3605_v19  ;;  %v4456_v24 = vld [vmem:[#allocation49_spill] sm:$0xff]  ;;  %v4457_v22 = vld [vmem:[#allocation50_spill] sm:$0xff] }
  0xb1   :  { %v713_v46 = vmul.f32 %v3483_v17, %v3605_v19  ;;  %v714_v10 = vmul.f32 %v3486_v0, %v3605_v19  ;;  %v715_v33 = vmul.f32 %v3489_v18, %v3605_v19  ;;  %v716_v48 = vmul.f32 %v3492_v23, %v3605_v19 }
  0xb2   :  { %v717_v41 = vmul.f32 %v3495_v1, %v3605_v19  ;;  %v718_v43 = vmul.f32 %v3498_v2, %v3605_v19  ;;  %v719_v50 = vmul.f32 %v3501_v3, %v3605_v19  ;;  %v720_v49 = vmul.f32 %v4453_v58, %v3605_v19  ;;  %v840_v3 = vpop.permute.xlu1 %839 }
  0xb3   :  { %v721_v31 = vmul.f32 %v4454_v11, %v3605_v19  ;;  %v722_v4 = vmul.f32 %v4455_v60, %v3605_v19  ;;  %v723_v56 = vmul.f32 %v4456_v24, %v3605_v19  ;;  %v724_v5 = vmul.f32 %v4457_v22, %v3605_v19 }
  0xb4   :  { %v725_v2 = vmul.f32 %v4417_v25, %v3605_v19  ;;  %v774_v1 = vadd.f32 %v710_v30, %v486_v52  ;;  %v775_v23 = vadd.f32 %v711_v27, %v487_v53  ;;  %v776_v18 = vadd.f32 %v712_v32, %v488_v55 }
  0xb5   :  { %v777_v58 = vadd.f32 %v713_v46, %v489_v57  ;;  %v778_v0 = vadd.f32 %v714_v10, %v490_v8  ;;  %v779_v17 = vadd.f32 %v715_v33, %v491_v26  ;;  %v780_v11 = vadd.f32 %v716_v48, %v492_v36  ;;  %v4458_v33 = vld [vmem:[#allocation3_spill] sm:$0xff] }
  0xb6   :  { %v781_v63 = vadd.f32 %v717_v41, %v493_v12  ;;  %v782_v16 = vadd.f32 %v718_v43, %v494_v59  ;;  %v783_v60 = vadd.f32 %v719_v50, %v495_v61  ;;  %v784_v62 = vadd.f32 %v720_v49, %v496_v15  ;;  %v4459_v43 = vld [vmem:[#allocation4_spill] sm:$0xff] }
  0xb7   :  { %v785_v42 = vadd.f32 %v721_v31, %v497_v28  ;;  %v786_v24 = vadd.f32 %v722_v4, %v498_v21  ;;  %v787_v38 = vadd.f32 %v723_v56, %v499_v44  ;;  %v788_v40 = vadd.f32 %v724_v5, %v500_v9  ;;  %v4462_v56 = vld [vmem:[#allocation7_spill] sm:$0xff] }
  0xb8   :  { %v789_v22 = vadd.f32 %v725_v2, %v501_v29  ;;  %v854_v47 = vadd.f32 %v840_v3, %v774_v1  ;;  %v855_v34 = vadd.f32 %v840_v3, %v775_v23  ;;  %v856_v19 = vadd.f32 %v840_v3, %v776_v18 }
  0xb9   :  { %v857_v52 = vadd.f32 %v840_v3, %v777_v58  ;;  %v858_v30 = vadd.f32 %v840_v3, %v778_v0  ;;  %v859_v53 = vadd.f32 %v840_v3, %v779_v17  ;;  %v860_v55 = vadd.f32 %v840_v3, %v780_v11  ;;  %v4460_v58 = vld [vmem:[#allocation5_spill] sm:$0xff]  ;;  %v4461_v11 = vld [vmem:[#allocation6_spill] sm:$0xff] }
  0xba   :  { %v861_v57 = vadd.f32 %v840_v3, %v781_v63  ;;  %v862_v8 = vadd.f32 %v840_v3, %v782_v16  ;;  %v863_v26 = vadd.f32 %v840_v3, %v783_v60  ;;  %v864_v36 = vadd.f32 %v840_v3, %v784_v62 }
  0xbb   :  { %v865_v12 = vadd.f32 %v840_v3, %v785_v42  ;;  %v866_v59 = vadd.f32 %v840_v3, %v786_v24  ;;  %v867_v61 = vadd.f32 %v840_v3, %v787_v38  ;;  %v868_v15 = vadd.f32 %v840_v3, %v788_v40 }
  0xbc   :  { %v869_v28 = vadd.f32 %v840_v3, %v789_v22  ;;  %v918_v21 = vmax.f32 %v854_v47, 0.0  ;;  %v919_v44 = vmax.f32 %v855_v34, 0.0  ;;  %v920_v5 = vmax.f32 %v856_v19, 0.0  ;;  %v4463_v19 = vld [vmem:[#allocation8_spill] sm:$0xff] }
  0xbd   :  { %v921_v2 = vmax.f32 %v857_v52, 0.0  ;;  %v922_v1 = vmax.f32 %v858_v30, 0.0  ;;  %v923_v23 = vmax.f32 %v859_v53, 0.0  ;;  %v924_v18 = vmax.f32 %v860_v55, 0.0  ;;  %v4464_v30 = vld [vmem:[#allocation9_spill] sm:$0xff]  ;;  %v4465_v55 = vld [vmem:[#allocation10_spill] sm:$0xff] }
  0xbe   :  { %v925_v9 = vmax.f32 %v861_v57, 0.0  ;;  %v926_v0 = vmax.f32 %v862_v8, 0.0  ;;  %v927_v17 = vmax.f32 %v863_v26, 0.0  ;;  %v928_v29 = vmax.f32 %v864_v36, 0.0  ;;  %v4466_v8 = vld [vmem:[#allocation11_spill] sm:$0xff] }
  0xbf   :  { %v929_v63 = vmax.f32 %v865_v12, 0.0  ;;  %v930_v16 = vmax.f32 %v866_v59, 0.0  ;;  %v931_v27 = vmax.f32 %v867_v61, 0.0  ;;  %v932_v62 = vmax.f32 %v868_v15, 0.0  ;;  %v4467_v59 = vld [vmem:[#allocation12_spill] sm:$0xff]  ;;  %v4468_v15 = vld [vmem:[#allocation13_spill] sm:$0xff] }
  0xc0   :  { %v933_v42 = vmax.f32 %v869_v28, 0.0  ;;  %v982_v32 = vadd.f32 %v926_v0, %v918_v21  ;;  %v983_v38 = vadd.f32 %v927_v17, %v919_v44  ;;  %v984_v40 = vadd.f32 %v928_v29, %v920_v5  ;;  %v4469_v21 = vld [vmem:[#allocation14_spill] sm:$0xff]  ;;  %v4470_v5 = vld [vmem:[#allocation15_spill] sm:$0xff] }
  0xc1   :  { %v985_v3 = vadd.f32 %v929_v63, %v921_v2  ;;  %v986_v47 = vadd.f32 %v930_v16, %v922_v1  ;;  %v987_v34 = vadd.f32 %v931_v27, %v923_v23  ;;  %v988_v46 = vadd.f32 %v932_v62, %v924_v18  ;;  %v4471_v1 = vld [vmem:[#allocation16_spill] sm:$0xff]  ;;  %v4472_v18 = vld [vmem:[#allocation17_spill] sm:$0xff]  ;;  %v4474_v17 = vld [vmem:[#allocation18_spill] sm:$0xff] }
  0xc2   :  { %v989_v10 = vadd.f32 %v933_v42, %v925_v9  ;;  %v230_v48 = vmul.f32 %v4458_v33, %v3625_v54  ;;  %v231_v50 = vmul.f32 %v4459_v43, %v3625_v54  ;;  %v232_v49 = vmul.f32 %v4460_v58, %v3625_v54 }
  0xc3   :  { %v1014_v41 = vadd.f32 %v986_v47, %v982_v32  ;;  %v233_v31 = vmul.f32 %v4461_v11, %v3625_v54  ;;  %v1015_v60 = vadd.f32 %v987_v34, %v983_v38  ;;  %v1016_v4 = vadd.f32 %v988_v46, %v984_v40  ;;  %v4476_v34 = vld [vmem:[#allocation29_spill] sm:$0xff] }
  0xc4   :  { %v1017_v24 = vadd.f32 %v989_v10, %v985_v3  ;;  %v234_v22 = vmul.f32 %v4462_v56, %v3625_v54  ;;  %v235_v52 = vmul.f32 %v4463_v19, %v3625_v54  ;;  %v236_v53 = vmul.f32 %v4464_v30, %v3625_v54  ;;  %v4475_v3 = vld [vmem:[#allocation28_spill] sm:$0xff]  ;;  %v4477_v10 = vld [vmem:[#allocation30_spill] sm:$0xff] }
  0xc5   :  { %v237_v57 = vmul.f32 %v4465_v55, %v3625_v54  ;;  %v238_v26 = vmul.f32 %v4466_v8, %v3625_v54  ;;  %v1030_v36 = vadd.f32 %v1016_v4, %v1014_v41  ;;  %v239_v61 = vmul.f32 %v4467_v59, %v3625_v54 }
  0xc6   :  { %v1031_v12 = vadd.f32 %v1017_v24, %v1015_v60  ;;  %v240_v28 = vmul.f32 %v4468_v15, %v3625_v54  ;;  %v241_v44 = vmul.f32 %v4469_v21, %v3625_v54  ;;  %v242_v2 = vmul.f32 %v4470_v5, %v3625_v54  ;;  %v4478_v60 = vld [vmem:[#allocation31_spill] sm:$0xff]  ;;  %v4479_v24 = vld [vmem:[#allocation32_spill] sm:$0xff] }
  0xc7   :  { %v243_v23 = vmul.f32 %v4471_v1, %v3625_v54  ;;  %v244_v9 = vmul.f32 %v4472_v18, %v3625_v54  ;;  %v245_v29 = vmul.f32 %v4474_v17, %v3625_v54  ;;  %v454_v63 = vmul.f32 %v4419_v51, %v3627_v39  ;;  %v4483_v21 = vld [vmem:[#allocation35_spill] sm:$0xff] }
  0xc8   :  { %v3747_v0 = vadd.f32 %v1031_v12, %v1030_v36  ;;  %v455_v16 = vmul.f32 %v4420_v13, %v3627_v39  ;;  %v456_v27 = vmul.f32 %v4421_v14, %v3627_v39  ;;  %v457_v62 = vmul.f32 %v4422_v20, %v3627_v39  ;;  %v4480_v12 = vld [vmem:[#allocation33_spill] sm:$0xff] }
  0xc9   :  { %v458_v42 = vmul.f32 %v4424_v45, %v3627_v39  ;;  %v459_v32 = vmul.f32 %v4425_v7, %v3627_v39  ;;  %v460_v54 = vmul.f32 %v4426_v6, %v3627_v39  ;;  %v461_v38 = vmul.f32 %v4427_v37, %v3627_v39 }
  0xca   :  { %4473 = vst [vmem:[#allocation53_spill] sm:$0xff] %v3747_v0  ;;  %1046 = vrot.lane.b32.xlu0 %v3747_v0, %s3199_s0  ;;  %v462_v40 = vmul.f32 %v4428_v35, %v3627_v39  ;;  %v463_v47 = vmul.f32 %v4475_v3, %v3627_v39  ;;  %v464_v46 = vmul.f32 %v4476_v34, %v3627_v39  ;;  %v4481_v35 = vld [vmem:[#allocation34_spill] sm:$0xff] }
  0xcb   :  { %v465_v41 = vmul.f32 %v4477_v10, %v3627_v39  ;;  %v466_v4 = vmul.f32 %v4478_v60, %v3627_v39  ;;  %v467_v36 = vmul.f32 %v4479_v24, %v3627_v39  ;;  %v468_v0 = vmul.f32 %v4480_v12, %v3627_v39  ;;  %v4482_v12 = vld [vmem:[#allocation69_spill] sm:$0xff] }
  0xcc   :  { %v469_v37 = vmul.f32 %v4481_v35, %v3627_v39  ;;  %v518_v6 = vadd.f32 %v454_v63, %v230_v48  ;;  %v519_v3 = vadd.f32 %v455_v16, %v231_v50  ;;  %v520_v7 = vadd.f32 %v456_v27, %v232_v49  ;;  %v4484_v39 = vld [vmem:[#allocation36_spill] sm:$0xff]  ;;  %v4485_v50 = vld [vmem:[#allocation37_spill] sm:$0xff]  ;;  %v4494_v16 = vld [vmem:[#allocation46_spill] sm:$0xff] }
  0xcd   :  { %v521_v45 = vadd.f32 %v457_v62, %v233_v31  ;;  %v522_v34 = vadd.f32 %v458_v42, %v234_v22  ;;  %v523_v20 = vadd.f32 %v459_v32, %v235_v52  ;;  %v524_v14 = vadd.f32 %v460_v54, %v236_v53  ;;  %v4486_v31 = vld [vmem:[#allocation38_spill] sm:$0xff]  ;;  %v4487_v52 = vld [vmem:[#allocation39_spill] sm:$0xff]  ;;  %v4495_v62 = vld [vmem:[#allocation48_spill] sm:$0xff] }
  0xce   :  { %v525_v10 = vadd.f32 %v461_v38, %v237_v57  ;;  %v526_v13 = vadd.f32 %v462_v40, %v238_v26  ;;  %v527_v51 = vadd.f32 %v463_v47, %v239_v61  ;;  %v528_v60 = vadd.f32 %v464_v46, %v240_v28  ;;  %v4488_v57 = vld [vmem:[#allocation40_spill] sm:$0xff]  ;;  %v4490_v28 = vld [vmem:[#allocation42_spill] sm:$0xff]  ;;  %v4496_v32 = vld [vmem:[#allocation49_spill] sm:$0xff] }
  0xcf   :  { %v529_v17 = vadd.f32 %v465_v41, %v241_v44  ;;  %v530_v18 = vadd.f32 %v466_v4, %v242_v2  ;;  %v531_v24 = vadd.f32 %v467_v36, %v243_v23  ;;  %v532_v1 = vadd.f32 %v468_v0, %v244_v9  ;;  %v4491_v2 = vld [vmem:[#allocation43_spill] sm:$0xff]  ;;  %v4492_v9 = vld [vmem:[#allocation44_spill] sm:$0xff]  ;;  %v4497_v38 = vld [vmem:[#allocation50_spill] sm:$0xff]  ;;  %v848_v4 = vpop.permute.xlu1 %847 }
  0xd0   :  { %v533_v5 = vadd.f32 %v469_v37, %v245_v29  ;;  %v742_v15 = vmul.f32 %v4483_v21, %v4482_v12  ;;  %v743_v48 = vmul.f32 %v4484_v39, %v4482_v12  ;;  %v744_v49 = vmul.f32 %v4485_v50, %v4482_v12  ;;  %v4489_v37 = vld [vmem:[#allocation41_spill] sm:$0xff] }
  0xd1   :  { %v745_v22 = vmul.f32 %v4486_v31, %v4482_v12  ;;  %v746_v53 = vmul.f32 %v4487_v52, %v4482_v12  ;;  %v747_v26 = vmul.f32 %v4488_v57, %v4482_v12  ;;  %v748_v61 = vmul.f32 %v4489_v37, %v4482_v12  ;;  %v4493_v29 = vld [vmem:[#allocation45_spill] sm:$0xff] }
  0xd2   :  { %v749_v44 = vmul.f32 %v4490_v28, %v4482_v12  ;;  %v750_v23 = vmul.f32 %v4491_v2, %v4482_v12  ;;  %v751_v0 = vmul.f32 %v4492_v9, %v4482_v12  ;;  %v752_v63 = vmul.f32 %v4493_v29, %v4482_v12 }
  0xd3   :  { %v753_v27 = vmul.f32 %v4494_v16, %v4482_v12  ;;  %v754_v42 = vmul.f32 %v4495_v62, %v4482_v12  ;;  %v755_v54 = vmul.f32 %v4496_v32, %v4482_v12  ;;  %v756_v40 = vmul.f32 %v4497_v38, %v4482_v12 }
  0xd4   :  { %v757_v47 = vmul.f32 %v4417_v25, %v4482_v12  ;;  %v806_v46 = vadd.f32 %v742_v15, %v518_v6  ;;  %v807_v41 = vadd.f32 %v743_v48, %v519_v3  ;;  %v808_v36 = vadd.f32 %v744_v49, %v520_v7 }
  0xd5   :  { %v809_v29 = vadd.f32 %v745_v22, %v521_v45  ;;  %v810_v9 = vadd.f32 %v746_v53, %v522_v34  ;;  %v811_v2 = vadd.f32 %v747_v26, %v523_v20  ;;  %v812_v16 = vadd.f32 %v748_v61, %v524_v14 }
  0xd6   :  { %v813_v28 = vadd.f32 %v749_v44, %v525_v10  ;;  %v814_v37 = vadd.f32 %v750_v23, %v526_v13  ;;  %v815_v62 = vadd.f32 %v751_v0, %v527_v51  ;;  %v816_v57 = vadd.f32 %v752_v63, %v528_v60  ;;  %v4498_v63 = vld [vmem:[#allocation68_spill] sm:$0xff] }
  0xd7   :  { %v817_v52 = vadd.f32 %v753_v27, %v529_v17  ;;  %v818_v32 = vadd.f32 %v754_v42, %v530_v18  ;;  %v819_v31 = vadd.f32 %v755_v54, %v531_v24  ;;  %v820_v50 = vadd.f32 %v756_v40, %v532_v1 }
  0xd8   :  { %v821_v38 = vadd.f32 %v757_v47, %v533_v5  ;;  %v886_v39 = vadd.f32 %v848_v4, %v806_v46  ;;  %v887_v21 = vadd.f32 %v848_v4, %v807_v41  ;;  %v888_v12 = vadd.f32 %v848_v4, %v808_v36  ;;  %v4499_v36 = vld [vmem:[#allocation13_spill] sm:$0xff] }
  0xd9   :  { %v889_v6 = vadd.f32 %v848_v4, %v809_v29  ;;  %v890_v15 = vadd.f32 %v848_v4, %v810_v9  ;;  %v891_v3 = vadd.f32 %v848_v4, %v811_v2  ;;  %v892_v7 = vadd.f32 %v848_v4, %v812_v16 }
  0xda   :  { %v893_v45 = vadd.f32 %v848_v4, %v813_v28  ;;  %v894_v34 = vadd.f32 %v848_v4, %v814_v37  ;;  %v895_v20 = vadd.f32 %v848_v4, %v815_v62  ;;  %v896_v14 = vadd.f32 %v848_v4, %v816_v57 }
  0xdb   :  { %v897_v10 = vadd.f32 %v848_v4, %v817_v52  ;;  %v898_v13 = vadd.f32 %v848_v4, %v818_v32  ;;  %v899_v51 = vadd.f32 %v848_v4, %v819_v31  ;;  %v900_v60 = vadd.f32 %v848_v4, %v820_v50 }
  0xdc   :  { %v901_v17 = vadd.f32 %v848_v4, %v821_v38  ;;  %v950_v18 = vmax.f32 %v886_v39, 0.0  ;;  %v951_v24 = vmax.f32 %v887_v21, 0.0  ;;  %v952_v1 = vmax.f32 %v888_v12, 0.0  ;;  %v4500_v12 = vld [vmem:[#allocation14_spill] sm:$0xff] }
  0xdd   :  { %v953_v5 = vmax.f32 %v889_v6, 0.0  ;;  %v954_v48 = vmax.f32 %v890_v15, 0.0  ;;  %v955_v49 = vmax.f32 %v891_v3, 0.0  ;;  %v956_v22 = vmax.f32 %v892_v7, 0.0  ;;  %v4501_v6 = vld [vmem:[#allocation15_spill] sm:$0xff]  ;;  %v4502_v15 = vld [vmem:[#allocation16_spill] sm:$0xff] }
  0xde   :  { %v957_v53 = vmax.f32 %v893_v45, 0.0  ;;  %v958_v26 = vmax.f32 %v894_v34, 0.0  ;;  %v959_v61 = vmax.f32 %v895_v20, 0.0  ;;  %v960_v44 = vmax.f32 %v896_v14, 0.0  ;;  %v4503_v3 = vld [vmem:[#allocation17_spill] sm:$0xff]  ;;  %v4504_v7 = vld [vmem:[#allocation18_spill] sm:$0xff] }
  0xdf   :  { %v961_v28 = vmax.f32 %v897_v10, 0.0  ;;  %v962_v37 = vmax.f32 %v898_v13, 0.0  ;;  %v963_v2 = vmax.f32 %v899_v51, 0.0  ;;  %v964_v57 = vmax.f32 %v900_v60, 0.0  ;;  %v4505_v34 = vld [vmem:[#allocation51_spill] sm:$0xff]  ;;  %v4507_v10 = vld [vmem:[#allocation20_spill] sm:$0xff] }
  0xe0   :  { %v965_v52 = vmax.f32 %v901_v17, 0.0  ;;  %v998_v23 = vadd.f32 %v958_v26, %v950_v18  ;;  %v999_v31 = vadd.f32 %v959_v61, %v951_v24  ;;  %v1000_v50 = vadd.f32 %v960_v44, %v952_v1  ;;  %v4506_v20 = vld [vmem:[#allocation19_spill] sm:$0xff]  ;;  %v4508_v51 = vld [vmem:[#allocation21_spill] sm:$0xff]  ;;  %v4509_v17 = vld [vmem:[#allocation22_spill] sm:$0xff] }
  0xe1   :  { %v1001_v9 = vadd.f32 %v961_v28, %v953_v5  ;;  %v1002_v39 = vadd.f32 %v962_v37, %v954_v48  ;;  %v1003_v21 = vadd.f32 %v963_v2, %v955_v49  ;;  %v1004_v0 = vadd.f32 %v964_v57, %v956_v22  ;;  %v4510_v24 = vld [vmem:[#allocation23_spill] sm:$0xff]  ;;  %v4511_v5 = vld [vmem:[#allocation24_spill] sm:$0xff]  ;;  %v4512_v49 = vld [vmem:[#allocation25_spill] sm:$0xff] }
  0xe2   :  { %v1005_v29 = vadd.f32 %v965_v52, %v957_v53  ;;  %v246_v16 = vmul.f32 %v4458_v33, %v4498_v63  ;;  %v247_v27 = vmul.f32 %v4459_v43, %v4498_v63  ;;  %v248_v32 = vmul.f32 %v4460_v58, %v4498_v63  ;;  %v4513_v53 = vld [vmem:[#allocation26_spill] sm:$0xff]  ;;  %v4514_v61 = vld [vmem:[#allocation27_spill] sm:$0xff]  ;;  %v4515_v28 = vld [vmem:[#allocation28_spill] sm:$0xff] }
  0xe3   :  { %v1022_v62 = vadd.f32 %v1002_v39, %v998_v23  ;;  %v1023_v42 = vadd.f32 %v1003_v21, %v999_v31  ;;  %v249_v54 = vmul.f32 %v4461_v11, %v4498_v63  ;;  %v1024_v38 = vadd.f32 %v1004_v0, %v1000_v50  ;;  %v4516_v2 = vld [vmem:[#allocation29_spill] sm:$0xff]  ;;  %v4517_v52 = vld [vmem:[#allocation30_spill] sm:$0xff]  ;;  %v4518_v31 = vld [vmem:[#allocation31_spill] sm:$0xff] }
  0xe4   :  { %v1025_v40 = vadd.f32 %v1005_v29, %v1001_v9  ;;  %v250_v47 = vmul.f32 %v4462_v56, %v4498_v63  ;;  %v251_v46 = vmul.f32 %v4463_v19, %v4498_v63  ;;  %v252_v33 = vmul.f32 %v4464_v30, %v4498_v63  ;;  %v4519_v9 = vld [vmem:[#allocation32_spill] sm:$0xff]  ;;  %v4520_v21 = vld [vmem:[#allocation33_spill] sm:$0xff] }
  0xe5   :  { %v253_v43 = vmul.f32 %v4465_v55, %v4498_v63  ;;  %v254_v58 = vmul.f32 %v4466_v8, %v4498_v63  ;;  %v255_v11 = vmul.f32 %v4467_v59, %v4498_v63  ;;  %v1034_v41 = vadd.f32 %v1024_v38, %v1022_v62 }
  0xe6   :  { %v1035_v4 = vadd.f32 %v1025_v40, %v1023_v42  ;;  %v256_v56 = vmul.f32 %v4499_v36, %v4498_v63  ;;  %v257_v19 = vmul.f32 %v4500_v12, %v4498_v63  ;;  %v258_v30 = vmul.f32 %v4501_v6, %v4498_v63 }
  0xe7   :  { %v259_v55 = vmul.f32 %v4502_v15, %v4498_v63  ;;  %v260_v8 = vmul.f32 %v4503_v3, %v4498_v63  ;;  %v261_v59 = vmul.f32 %v4504_v7, %v4498_v63  ;;  %v470_v14 = vmul.f32 %v4506_v20, %v4505_v34 }
  0xe8   :  { %v3849_v45 = vadd.f32 %v1035_v4, %v1034_v41  ;;  %v471_v13 = vmul.f32 %v4507_v10, %v4505_v34  ;;  %v472_v60 = vmul.f32 %v4508_v51, %v4505_v34  ;;  %v473_v18 = vmul.f32 %v4509_v17, %v4505_v34  ;;  %v4521_v17 = vld [vmem:[#allocation52_spill] sm:$0xff] }
  0xe9   :  { %v474_v1 = vmul.f32 %v4510_v24, %v4505_v34  ;;  %v475_v48 = vmul.f32 %v4511_v5, %v4505_v34  ;;  %v476_v22 = vmul.f32 %v4512_v49, %v4505_v34  ;;  %v477_v26 = vmul.f32 %v4513_v53, %v4505_v34  ;;  %v4522_v24 = vld [vmem:[#allocation35_spill] sm:$0xff]  ;;  %v4535_v49 = vld [vmem:[#allocation49_spill] sm:$0xff]  ;;  %v4536_v53 = vld [vmem:[#allocation50_spill] sm:$0xff] }
  0xea   :  { %1050 = vrot.lane.b32.xlu0 %v3849_v45, %s3199_s0  ;;  %v478_v44 = vmul.f32 %v4514_v61, %v4505_v34  ;;  %v479_v37 = vmul.f32 %v4515_v28, %v4505_v34  ;;  %v480_v57 = vmul.f32 %v4516_v2, %v4505_v34  ;;  %v481_v23 = vmul.f32 %v4517_v52, %v4505_v34  ;;  %v852_v2 = vpop.permute.xlu1 %851 }
  0xeb   :  { %v482_v50 = vmul.f32 %v4518_v31, %v4505_v34  ;;  %v483_v39 = vmul.f32 %v4519_v9, %v4505_v34  ;;  %v484_v0 = vmul.f32 %v4520_v21, %v4505_v34  ;;  %v485_v29 = vmul.f32 %v4481_v35, %v4505_v34  ;;  %v4523_v35 = vld [vmem:[#allocation36_spill] sm:$0xff] }
  0xec   :  { %v534_v63 = vadd.f32 %v470_v14, %v246_v16  ;;  %v535_v62 = vadd.f32 %v471_v13, %v247_v27  ;;  %v536_v42 = vadd.f32 %v472_v60, %v248_v32  ;;  %v537_v38 = vadd.f32 %v473_v18, %v249_v54  ;;  %v4524_v27 = vld [vmem:[#allocation37_spill] sm:$0xff]  ;;  %v4525_v54 = vld [vmem:[#allocation38_spill] sm:$0xff] }
  0xed   :  { %v538_v40 = vadd.f32 %v474_v1, %v250_v47  ;;  %v539_v41 = vadd.f32 %v475_v48, %v251_v46  ;;  %v540_v4 = vadd.f32 %v476_v22, %v252_v33  ;;  %v541_v36 = vadd.f32 %v477_v26, %v253_v43  ;;  %v4526_v46 = vld [vmem:[#allocation39_spill] sm:$0xff]  ;;  %v4527_v43 = vld [vmem:[#allocation40_spill] sm:$0xff]  ;;  %v4532_v14 = vld [vmem:[#allocation45_spill] sm:$0xff] }
  0xee   :  { %v542_v12 = vadd.f32 %v478_v44, %v254_v58  ;;  %v543_v6 = vadd.f32 %v479_v37, %v255_v11  ;;  %v544_v15 = vadd.f32 %v480_v57, %v256_v56  ;;  %v545_v3 = vadd.f32 %v481_v23, %v257_v19  ;;  %v4528_v11 = vld [vmem:[#allocation41_spill] sm:$0xff]  ;;  %v4529_v19 = vld [vmem:[#allocation42_spill] sm:$0xff]  ;;  %v4534_v1 = vld [vmem:[#allocation48_spill] sm:$0xff] }
  0xef   :  { %v546_v7 = vadd.f32 %v482_v50, %v258_v30  ;;  %v547_v20 = vadd.f32 %v483_v39, %v259_v55  ;;  %v548_v10 = vadd.f32 %v484_v0, %v260_v8  ;;  %v549_v51 = vadd.f32 %v485_v29, %v261_v59  ;;  %v4530_v55 = vld [vmem:[#allocation43_spill] sm:$0xff]  ;;  %v4531_v59 = vld [vmem:[#allocation44_spill] sm:$0xff]  ;;  %v4533_v60 = vld [vmem:[#allocation46_spill] sm:$0xff] }
  0xf0   :  { %v758_v5 = vmul.f32 %v4522_v24, %v4521_v17  ;;  %v759_v16 = vmul.f32 %v4523_v35, %v4521_v17  ;;  %v760_v32 = vmul.f32 %v4524_v27, %v4521_v17  ;;  %v761_v47 = vmul.f32 %v4525_v54, %v4521_v17 }
  0xf1   :  { %v762_v33 = vmul.f32 %v4526_v46, %v4521_v17  ;;  %v763_v58 = vmul.f32 %v4527_v43, %v4521_v17  ;;  %v764_v56 = vmul.f32 %v4528_v11, %v4521_v17  ;;  %v765_v30 = vmul.f32 %v4529_v19, %v4521_v17 }
  0xf2   :  { %v766_v8 = vmul.f32 %v4530_v55, %v4521_v17  ;;  %v767_v34 = vmul.f32 %v4531_v59, %v4521_v17  ;;  %v768_v13 = vmul.f32 %v4532_v14, %v4521_v17  ;;  %v769_v18 = vmul.f32 %v4533_v60, %v4521_v17 }
  0xf3   :  { %v770_v48 = vmul.f32 %v4534_v1, %v4521_v17  ;;  %v771_v22 = vmul.f32 %v4535_v49, %v4521_v17  ;;  %v772_v26 = vmul.f32 %v4536_v53, %v4521_v17  ;;  %v773_v61 = vmul.f32 %v4417_v25, %v4521_v17 }
  0xf4   :  { %v822_v44 = vadd.f32 %v758_v5, %v534_v63  ;;  %v823_v28 = vadd.f32 %v759_v16, %v535_v62  ;;  %v824_v37 = vadd.f32 %v760_v32, %v536_v42  ;;  %v825_v57 = vadd.f32 %v761_v47, %v537_v38 }
  0xf5   :  { %v826_v52 = vadd.f32 %v762_v33, %v538_v40  ;;  %v827_v23 = vadd.f32 %v763_v58, %v539_v41  ;;  %v828_v31 = vadd.f32 %v764_v56, %v540_v4  ;;  %v829_v50 = vadd.f32 %v765_v30, %v541_v36 }
  0xf6   :  { %v830_v9 = vadd.f32 %v766_v8, %v542_v12  ;;  %v831_v39 = vadd.f32 %v767_v34, %v543_v6  ;;  %v832_v21 = vadd.f32 %v768_v13, %v544_v15  ;;  %v833_v0 = vadd.f32 %v769_v18, %v545_v3 }
  0xf7   :  { %v834_v29 = vadd.f32 %v770_v48, %v546_v7  ;;  %v835_v24 = vadd.f32 %v771_v22, %v547_v20  ;;  %v836_v35 = vadd.f32 %v772_v26, %v548_v10  ;;  %v837_v27 = vadd.f32 %v773_v61, %v549_v51  ;;  %v3920_v61 = vld [vmem:[%s4233_s1] sm:$0xff] }
  0xf8   :  { %v902_v54 = vadd.f32 %v852_v2, %v822_v44  ;;  %v903_v46 = vadd.f32 %v852_v2, %v823_v28  ;;  %v904_v25 = vadd.f32 %v852_v2, %v824_v37  ;;  %v905_v63 = vadd.f32 %v852_v2, %v825_v57 }
  0xf9   :  { %v906_v62 = vadd.f32 %v852_v2, %v826_v52  ;;  %v907_v42 = vadd.f32 %v852_v2, %v827_v23  ;;  %v908_v17 = vadd.f32 %v852_v2, %v828_v31  ;;  %v909_v38 = vadd.f32 %v852_v2, %v829_v50  ;;  %v3193_v52 = vld [vmem:[%s4233_s1 + $0x8] sm:$0xff]  ;;  %v3194_v23 = vld [vmem:[%s4233_s1 + $0x18] sm:$0xff] }
  0xfa   :  { %v910_v40 = vadd.f32 %v852_v2, %v830_v9  ;;  %v911_v41 = vadd.f32 %v852_v2, %v831_v39  ;;  %v912_v4 = vadd.f32 %v852_v2, %v832_v21  ;;  %v913_v36 = vadd.f32 %v852_v2, %v833_v0  ;;  %v4537_v50 = vld [vmem:[#allocation53_spill] sm:$0xff]  ;;  %v4538_v21 = vld [vmem:[#allocation47_spill] sm:$0xff] }
  0xfb   :  { %v914_v12 = vadd.f32 %v852_v2, %v834_v29  ;;  %v915_v6 = vadd.f32 %v852_v2, %v835_v24  ;;  %v916_v15 = vadd.f32 %v852_v2, %v836_v35  ;;  %v917_v3 = vadd.f32 %v852_v2, %v837_v27  ;;  %v3192_v2 = vld [vmem:[%s4233_s1 + $0x10] sm:$0xff] }
  0xfc   :  { %v966_v7 = vmax.f32 %v902_v54, 0.0  ;;  %v967_v20 = vmax.f32 %v903_v46, 0.0  ;;  %v968_v10 = vmax.f32 %v904_v25, 0.0  ;;  %v969_v51 = vmax.f32 %v905_v63, 0.0 }
  0xfd   :  { %v970_v5 = vmax.f32 %v906_v62, 0.0  ;;  %v971_v16 = vmax.f32 %v907_v42, 0.0  ;;  %v972_v32 = vmax.f32 %v908_v17, 0.0  ;;  %v973_v47 = vmax.f32 %v909_v38, 0.0 }
  0xfe   :  { %v974_v33 = vmax.f32 %v910_v40, 0.0  ;;  %v975_v43 = vmax.f32 %v911_v41, 0.0  ;;  %v976_v58 = vmax.f32 %v912_v4, 0.0  ;;  %v977_v11 = vmax.f32 %v913_v36, 0.0 }
  0xff   :  { %v978_v56 = vmax.f32 %v914_v12, 0.0  ;;  %v979_v19 = vmax.f32 %v915_v6, 0.0  ;;  %v980_v30 = vmax.f32 %v916_v15, 0.0  ;;  %v981_v55 = vmax.f32 %v917_v3, 0.0 }
 0x100   :  { %v1006_v8 = vadd.f32 %v974_v33, %v966_v7  ;;  %v1007_v59 = vadd.f32 %v975_v43, %v967_v20  ;;  %v1008_v34 = vadd.f32 %v976_v58, %v968_v10  ;;  %v1009_v14 = vadd.f32 %v977_v11, %v969_v51 }
 0x101   :  { %v1010_v13 = vadd.f32 %v978_v56, %v970_v5  ;;  %v1011_v60 = vadd.f32 %v979_v19, %v971_v16  ;;  %v1012_v18 = vadd.f32 %v980_v30, %v972_v32  ;;  %v1013_v1 = vadd.f32 %v981_v55, %v973_v47 }
 0x102   :  { %v3200_v53 = vmov 1   ;;  %v3201_v57 = vmov 2   ;;  %v3203_v54 = vmov 0.0|0.0   ;;  %v3205_v46 = vmov 0.0  }
 0x103   :  { %v1026_v48 = vadd.f32 %v1010_v13, %v1006_v8  ;;  %v1027_v49 = vadd.f32 %v1011_v60, %v1007_v59  ;;  %v1028_v22 = vadd.f32 %v1012_v18, %v1008_v34  ;;  %3177 = vset.pattern.permute.xlu1 %v3200_v53  ;;  %3176 = vset.pattern.permute.xlu0 %v3200_v53  ;;  %v3206_v62 = vmov 3  }
 0x104   :  { %v1029_v26 = vadd.f32 %v1013_v1, %v1009_v14  ;;  %1087 = vperm.xlu0 %3176, %v3920_v61   ;;  %3012 = vmatprep.subr.bf16.mxu1 %v3203_v54 }
 0x105   :  { %v1036_v44 = vadd.f32 %v1028_v22, %v1026_v48  ;;  %3018 = vmatprep.subr.bf16.mxu0 %v3203_v54  ;;  %2822 = vmatprep.mubr.msk.f32.mxu1 %vm3204_vm0, %v3205_v46 }
 0x106   :  { %v1037_v28 = vadd.f32 %v1029_v26, %v1027_v49  ;;  %2833 = vmatprep.mubr.msk.f32.mxu0 %vm3204_vm0, %v3205_v46 }
 0x108   :  { %v1041_v37 = vadd.f32 %v1037_v28, %v1036_v44  ;;  %1095 = vperm.xlu0 %3176, %v3192_v2  }
 0x10a   :  { %1052 = vrot.lane.b32.xlu1 %v1041_v37, %s3199_s0 }
 0x10c   :  { %3179 = vset.pattern.permute.xlu0 %v3201_v57 }
 0x10d   :  { %1111 = vperm.xlu0 %3179, %v3193_v52  }
 0x10e   :  { %1091 = vperm.xlu1 %3177, %v3193_v52  }
 0x111   :  { %1119 = vperm.xlu0 %3179, %v3194_v23  }
 0x112   :  { %3178 = vset.pattern.permute.xlu1 %v3201_v57 }
 0x113   :  { %1107 = vperm.xlu1 %3178, %v3920_v61  }
 0x115   :  { %3182 = vset.pattern.permute.xlu0 %v3206_v62 }
 0x116   :  { %1128 = vperm.xlu0 %3182, %v3920_v61  }
 0x117   :  { %3180 = vset.pattern.permute.xlu1 %v3200_v53 }
 0x118   :  { %1099 = vperm.xlu1 %3180, %v3194_v23  }
 0x11c   :  { %3181 = vset.pattern.permute.xlu1 %v3201_v57 }
 0x11d   :  { %1115 = vperm.xlu1 %3181, %v3192_v2  }
 0x120   :  { %v1049_v39 = vpop.permute.xlu1 %1048 }
 0x121   :  { %v1059_v0 = vadd.f32 %v1049_v39, %v4538_v21  ;;  %v1126_v21 = vld [vmem:[%s4235_s2] sm:$0xff] }
 0x13c   :  { %v1047_v31 = vpop.permute.xlu0 %1046 }
 0x13d   :  { %v1058_v9 = vadd.f32 %v1047_v31, %v4537_v50 }
 0x13f   :  { %1066 = vrot.lane.b32.xlu1 %v1058_v9, %s3202_s17 }
 0x143   :  { %1068 = vrot.lane.b32.xlu1 %v1059_v0, %s3202_s17 }
 0x15c   :  { %v1051_v29 = vpop.permute.xlu0 %1050 }
 0x15d   :  { %v3937_v24 = vadd.f32 %v1051_v29, %v3849_v45 }
 0x15f   :  { %1070 = vrot.lane.b32.xlu1 %v3937_v24, %s3202_s17 }
 0x17c   :  { %v1053_v35 = vpop.permute.xlu1 %1052 }
 0x17d   :  { %v3940_v27 = vadd.f32 %v1053_v35, %v1041_v37 }
 0x17f   :  { %1072 = vrot.lane.b32.xlu1 %v3940_v27, %s3202_s17 }
 0x183   :  { %v1088_v17 = vpop.permute.xlu0 %1087 }
 0x187   :  { %v1096_v41 = vpop.permute.xlu0 %1095 }
 0x18c   :  { %v1112_v7 = vpop.permute.xlu0 %1111 }
 0x18d   :  { %v1092_v45 = vpop.permute.xlu1 %1091 }
 0x192   :  { %v1108_v25 = vpop.permute.xlu1 %1107 }
 0x197   :  { %v3949_v63 = vpop.permute.xlu1 %1099 }
 0x19c   :  { %v1116_v42 = vpop.permute.xlu1 %1115 }
 0x1b1   :  { %v1067_v38 = vpop.permute.xlu1 %1066 }
 0x1b2   :  { %v1078_v40 = vadd.f32 %v1067_v38, %v1058_v9 }
 0x1b4   :  { %v1082_v4 = vmul.f32 0.015625, %v1078_v40  ;;  %v1120_v40 = vpop.permute.xlu0 %1119 }
 0x1b5   :  { %v1069_v36 = vpop.permute.xlu1 %1068 }
 0x1b6   :  { %v1102_v12 = vmul.f32 %v1088_v17, %v1082_v4  ;;  %v1079_v6 = vadd.f32 %v1069_v36, %v1059_v0  ;;  %v1133_v0 = vsel %vm1131_vm2, %v1126_v21, 0 }
 0x1b7   :  { %v4018_v29 = vand.u32 4294901760, %v1133_v0 }
 0x1b8   :  { %v3952_v15 = vadd.f32 %v1108_v25, %v1102_v12  ;;  %v1083_v3 = vmul.f32 0.015625, %v1079_v6 }
 0x1b9   :  { %v1205_v35 = vsub.f32 %v1133_v0, %v4018_v29 }
 0x1ba   :  { %v1103_v20 = vmul.f32 %v1092_v45, %v1083_v3  ;;  %v1136_v10 = vand.u32 4294901760, %v3952_v15  ;;  %v3957_v51 = vsel %vm1622_vm1, %v3952_v15, 0 }
 0x1bb   :  { %v1659_v5 = vand.u32 4294901760, %v3957_v51 }
 0x1bc   :  { %v3960_v16 = vadd.f32 %v1112_v7, %v1103_v20  ;;  %v3963_v32 = vsub.f32 %v3952_v15, %v1136_v10 }
 0x1bd   :  { %v3968_v47 = vsub.f32 %v3957_v51, %v1659_v5 }
 0x1be   :  { %v3972_v33 = vsel %vm1622_vm1, %v3960_v16, 0  ;;  %v1139_v43 = vand.u32 4294901760, %v3960_v16  ;;  %v1217_v58 = vand.u32 4294901760, %v3963_v32 }
 0x1bf   :  { %v1662_v11 = vand.u32 4294901760, %v3972_v33  ;;  %v1740_v56 = vand.u32 4294901760, %v3968_v47 }
 0x1c0   :  { %v3978_v19 = vpack.c.bf16 %v1139_v43, %v1136_v10  ;;  %v3981_v30 = vsub.f32 %v3960_v16, %v1139_v43  ;;  %v1218_v8 = vsub.f32 %v3963_v32, %v1217_v58 }
 0x1c1   :  { %v3986_v55 = vsub.f32 %v3972_v33, %v1662_v11  ;;  %v1741_v14 = vsub.f32 %v3968_v47, %v1740_v56 }
 0x1c2   :  { %3014 = vmatpush3.bf16.msra.mxu1 %v3978_v19  ;;  %v1224_v59 = vand.u32 4294901760, %v3981_v30  ;;  %v3025_v34 = vpack.c.bf16 %v3981_v30, %v3963_v32  ;;  %v1219_v22 = vand.u32 4294901760, %v1218_v8 }
 0x1c3   :  { %3015 = vmatprep.subr.bf16.mxu1 %v3203_v54  ;;  %v1747_v13 = vand.u32 4294901760, %v3986_v55  ;;  %v3061_v60 = vpack.c.bf16 %v3986_v55, %v3968_v47  ;;  %v1742_v26 = vand.u32 4294901760, %v1741_v14 }
 0x1c4   :  { %v1225_v18 = vsub.f32 %v3981_v30, %v1224_v59  ;;  %v3999_v1 = vpack.c.bf16 %v1224_v59, %v1217_v58  ;;  %v1129_v30 = vpop.permute.xlu0 %1128 }
 0x1c5   :  { %v1748_v48 = vsub.f32 %v3986_v55, %v1747_v13  ;;  %v4002_v49 = vpack.c.bf16 %v1747_v13, %v1740_v56 }
 0x1c6   :  { %v1226_v53 = vand.u32 4294901760, %v1225_v18 }
 0x1c7   :  { %v1749_v44 = vand.u32 4294901760, %v1748_v48 }
 0x1c8   :  { %v3019_v28 = vpack.c.bf16 %v1226_v53, %v1219_v22 }
 0x1c9   :  { %v4004_v37 = vpack.c.bf16 %v1749_v44, %v1742_v26 }
 0x1ca   :  { %3020 = vmatpush3.bf16.msra.mxu0 %v3019_v28  ;;  %v4048_v28 = vpack.c.bf16 %v1662_v11, %v1659_v5 }
 0x1cb   :  { %3021 = vmatprep.subr.bf16.mxu0 %v3203_v54 }
 0x1d1   :  { %v1071_v2 = vpop.permute.xlu1 %1070 }
 0x1d2   :  { %v1080_v57 = vadd.f32 %v1071_v2, %v3937_v24 }
 0x1d4   :  { %v1084_v52 = vmul.f32 0.015625, %v1080_v57 }
 0x1d6   :  { %v1104_v23 = vmul.f32 %v1096_v41, %v1084_v52 }
 0x1d8   :  { %v4008_v31 = vadd.f32 %v1116_v42, %v1104_v23  ;;  %v1206_v42 = vand.u32 4294901760, %v1205_v35 }
 0x1da   :  { %v1653_v50 = vsel %vm1622_vm1, %v4008_v31, 0  ;;  %v1142_v25 = vand.u32 4294901760, %v4008_v31  ;;  %v1207_v4 = vsub.f32 %v1205_v35, %v1206_v42 }
 0x1db   :  { %v1665_v9 = vand.u32 4294901760, %v1653_v50 }
 0x1dc   :  { %v1230_v38 = vsub.f32 %v4008_v31, %v1142_v25 }
 0x1dd   :  { %v4012_v39 = vsub.f32 %v1653_v50, %v1665_v9 }
 0x1de   :  { %v1231_v6 = vand.u32 4294901760, %v1230_v38 }
 0x1e0   :  { %v1232_v43 = vsub.f32 %v1230_v38, %v1231_v6 }
 0x1e2   :  { %v1233_v48 = vand.u32 4294901760, %v1232_v43 }
 0x1f1   :  { %v1073_v24 = vpop.permute.xlu1 %1072 }
 0x1f2   :  { %v1081_v45 = vadd.f32 %v1073_v24, %v3940_v27  ;;  %v1754_v27 = vand.u32 4294901760, %v4012_v39 }
 0x1f4   :  { %v1085_v62 = vmul.f32 0.015625, %v1081_v45  ;;  %v1755_v56 = vsub.f32 %v4012_v39, %v1754_v27 }
 0x1f6   :  { %v1105_v17 = vmul.f32 %v3949_v63, %v1085_v62  ;;  %v1208_v63 = vand.u32 4294901760, %v1207_v4  ;;  %v1756_v53 = vand.u32 4294901760, %v1755_v56 }
 0x1f8   :  { %v4025_v41 = vadd.f32 %v1120_v40, %v1105_v17 }
 0x1fa   :  { %v1656_v36 = vsel %vm1622_vm1, %v4025_v41, 0  ;;  %v1145_v12 = vand.u32 4294901760, %v4025_v41 }
 0x1fb   :  { %v1668_v3 = vand.u32 4294901760, %v1656_v36 }
 0x1fc   :  { %v3016_v7 = vpack.c.bf16 %v1145_v12, %v1142_v25  ;;  %v1237_v20 = vsub.f32 %v4025_v41, %v1145_v12 }
 0x1fd   :  { %v4032_v10 = vsub.f32 %v1656_v36, %v1668_v3  ;;  %v4062_v5 = vpack.c.bf16 %v1668_v3, %v1665_v9 }
 0x1fe   :  { %3017 = vmatpush3.bf16.msra.mxu1 %v3016_v7  ;;  %v1238_v58 = vand.u32 4294901760, %v1237_v20  ;;  %v3028_v51 = vpack.c.bf16 %v1237_v20, %v1230_v38 }
 0x1ff   :  { %3048 = vmatprep.subr.bf16.mxu1 %v3203_v54  ;;  %v1761_v8 = vand.u32 4294901760, %v4032_v10  ;;  %v3064_v59 = vpack.c.bf16 %v4032_v10, %v4012_v39 }
 0x200   :  { %v1239_v14 = vsub.f32 %v1237_v20, %v1238_v58  ;;  %v3040_v32 = vpack.c.bf16 %v1238_v58, %v1231_v6 }
 0x201   :  { %2823 = vmatmul.mubr.f32.vlgmr.msra.gmra.mrb[0].mxu1 %v1208_v63  ;;  %v1762_v13 = vsub.f32 %v4032_v10, %v1761_v8  ;;  %v4040_v18 = vpack.c.bf16 %v1761_v8, %v1754_v27 }
 0x202   :  { %v1240_v22 = vand.u32 4294901760, %v1239_v14  ;;  %2888 = vmatprep.mubr.msk.f32.mxu1 %vm3204_vm0, %v3205_v46 }
 0x203   :  { %v1763_v26 = vand.u32 4294901760, %v1762_v13 }
 0x204   :  { %v3022_v44 = vpack.c.bf16 %v1240_v22, %v1233_v48 }
 0x205   :  { %v4050_v2 = vpack.c.bf16 %v1763_v26, %v1756_v53 }
 0x206   :  { %3023 = vmatpush3.bf16.msra.mxu0 %v3022_v44 }
 0x207   :  { %3050 = vmatpush3.bf16.xpose.msra.mxu1 %v4048_v28  ;;  %3024 = vmatprep.subr.bf16.mxu0 %v3203_v54 }
 0x208   :  { %3051 = vmatprep.subr.bf16.mxu1 %v3203_v54 }
 0x209   :  { %2834 = vmatmul.mubr.f32.vlgmr.msra.gmra.mrb[0].mxu0 %v4018_v29 }
 0x20a   :  { %3026 = vmatpush3.bf16.msra.mxu0 %v3025_v34  ;;  %2844 = vmatprep.mubr.msk.f32.mxu0 %vm3204_vm0, %v3205_v46 }
 0x20b   :  { %3027 = vmatprep.subr.bf16.mxu0 %v3203_v54 }
 0x20e   :  { %3029 = vmatpush3.bf16.msra.mxu0 %v3028_v51 }
 0x20f   :  { %3053 = vmatpush3.bf16.xpose.msra.mxu1 %v4062_v5  ;;  %3030 = vmatprep.subr.bf16.mxu0 %v3203_v54 }
 0x210   :  { %3054 = vmatprep.subr.bf16.mxu1 %v3203_v54 }
 0x211   :  { %2845 = vmatmul.mubr.f32.vlgmr.msra.gmra.mrb[0].mxu0 %v1205_v35 }
 0x212   :  { %3032 = vmatpush3.bf16.msra.mxu0 %v3978_v19  ;;  %2855 = vmatprep.mubr.msk.f32.mxu0 %vm3204_vm0, %v3205_v46 }
 0x213   :  { %3033 = vmatprep.subr.bf16.mxu0 %v3203_v54 }
 0x216   :  { %3035 = vmatpush3.bf16.msra.mxu0 %v3016_v7 }
 0x217   :  { %3036 = vmatprep.subr.bf16.mxu0 %v3203_v54 }
 0x219   :  { %2856 = vmatmul.mubr.f32.vlgmr.msra.gmra.mrb[0].mxu0 %v1206_v42 }
 0x21a   :  { %3038 = vmatpush3.bf16.msra.mxu0 %v3999_v1  ;;  %2866 = vmatprep.mubr.msk.f32.mxu0 %vm3204_vm0, %v3205_v46 }
 0x21b   :  { %3039 = vmatprep.subr.bf16.mxu0 %v3203_v54 }
 0x21e   :  { %3041 = vmatpush3.bf16.msra.mxu0 %v3040_v32 }
 0x21f   :  { %3042 = vmatprep.subr.bf16.mxu0 %v3203_v54 }
 0x221   :  { %2867 = vmatmul.mubr.f32.vlgmr.msra.gmra.mrb[0].mxu0 %v4018_v29 }
 0x222   :  { %3044 = vmatpush3.bf16.msra.mxu0 %v3978_v19  ;;  %2877 = vmatprep.mubr.msk.f32.mxu0 %vm3204_vm0, %v3205_v46 }
 0x223   :  { %3045 = vmatprep.subr.bf16.mxu0 %v3203_v54 }
 0x226   :  { %3047 = vmatpush3.bf16.msra.mxu0 %v3016_v7 }
 0x227   :  { %3090 = vmatprep.subr.bf16.mxu0 %v3203_v54 }
 0x229   :  { %2878 = vmatmul.mubr.f32.vlgmr.msra.gmra.mrb[0].mxu0 %v4018_v29 }
 0x22a   :  { %2965 = vmatprep.mubr.msk.f32.mxu0 %vm3204_vm0, %v3205_v46 }
 0x2d4   :  { %v1210_v33 = vpop.f32.mrb[0].mxu1 }
 0x2d5   :  { %v2824_v11 = vpop.f32.mrb[1].mxu1  ;;  %v1211_v34 = vadd.f32 %v1210_v33, %v1129_v30 }
 0x2fc   :  { %v1616_v1 = vpop.f32.mrb[0].mxu0 }
 0x2fd   :  { %v3121_v19 = vadd.f32 %v1616_v1, %v1211_v34  ;;  %v2879_v57 = vpop.f32.mrb[1].mxu0 }
 0x2ff   :  { %v2160_v52 = vsel %vm2159_vm3, %v3121_v19, -inf  ;;  %v1623_v23 = vsel %vm1622_vm1, %v3121_v19, -inf }
 0x300   :  { %2161 = vmax.xlane.f32.xlu1 %v2160_v52  ;;  %1624 = vmax.xlane.f32.xlu0 %v1623_v23 }
 0x38d   :  { %v2162_v50 = vpop.xlane.xlu1 %2161  ;;  %v1625_v29 = vpop.xlane.xlu0 %1624 }
 0x38e   :  { %v2163_v9 = vsub.f32 %v3121_v19, %v2162_v50  ;;  %v1626_v24 = vsub.f32 %v3121_v19, %v1625_v29 }
 0x390   :  { %v2164_v21 = vmul.f32 1.442695, %v2163_v9  ;;  %v1627_v35 = vmul.f32 1.442695, %v1626_v24 }
 0x392   :  { %3183 = vpow2.f32 %v2164_v21 }
 0x393   :  { %3185 = vpow2.f32 %v1627_v35 }
 0x39c   :  { %v4087_v0 = vpop.eup %3183 }
 0x39d   :  { %2167 = vrot.lane.b32.xlu1 %v4087_v0, %s3207_s19  ;;  %v3186_v62 = vpop.eup %3185 }
 0x39e   :  { %v1629_v17 = vsel %vm1622_vm1, %v3186_v62, 0.0 }
 0x3a1   :  { %2190 = vrot.lane.b32.xlu1 %v3960_v16, %s3207_s19 }
 0x3a5   :  { %2192 = vrot.lane.b32.xlu1 %v4008_v31, %s3207_s19 }
 0x3a9   :  { %2194 = vrot.lane.b32.xlu1 %v4025_v41, %s3207_s19 }
 0x40f   :  { %v2168_v45 = vpop.permute.xlu1 %2167 }
 0x410   :  { %v2170_v25 = vsel %vm1622_vm1, %v2168_v45, 0.0 }
 0x411   :  { %2171 = vadd.xlane.f32.xlu0 %v2170_v25 }
 0x413   :  { %v2191_v42 = vpop.permute.xlu1 %2190 }
 0x414   :  { %v4116_v63 = vsel %vm1622_vm1, %v2191_v42, 0 }
 0x415   :  { %1630 = vadd.xlane.f32.xlu0 %v1629_v17  ;;  %v2210_v58 = vand.u32 4294901760, %v4116_v63 }
 0x417   :  { %v2193_v16 = vpop.permute.xlu1 %2192  ;;  %v4122_v8 = vsub.f32 %v4116_v63, %v2210_v58 }
 0x418   :  { %v2202_v38 = vsel %vm1622_vm1, %v2193_v16, 0 }
 0x419   :  { %v2213_v31 = vand.u32 4294901760, %v2202_v38 }
 0x41b   :  { %v2195_v40 = vpop.permute.xlu1 %2194  ;;  %v4101_v4 = vsub.f32 %v2202_v38, %v2213_v31 }
 0x41c   :  { %v2204_v41 = vsel %vm1622_vm1, %v2195_v40, 0 }
 0x41d   :  { %v2216_v36 = vand.u32 4294901760, %v2204_v41  ;;  %v2302_v3 = vand.u32 4294901760, %v4101_v4 }
 0x41f   :  { %v4103_v12 = vpack.c.bf16 %v2216_v36, %v2213_v31  ;;  %v4105_v6 = vsub.f32 %v2204_v41, %v2216_v36  ;;  %v2303_v29 = vsub.f32 %v4101_v4, %v2302_v3 }
 0x421   :  { %v2309_v27 = vand.u32 4294901760, %v4105_v6  ;;  %v3100_v7 = vpack.c.bf16 %v4105_v6, %v4101_v4  ;;  %v2304_v17 = vand.u32 4294901760, %v2303_v29 }
 0x423   :  { %v4111_v20 = vpack.c.bf16 %v2309_v27, %v2302_v3  ;;  %v2310_v23 = vsub.f32 %v4105_v6, %v2309_v27  ;;  %v2723_v6 = vld [vmem:[%s4235_s2 + $0x10] sm:$0xff] }
 0x425   :  { %v2311_v45 = vand.u32 4294901760, %v2310_v23 }
 0x427   :  { %v3094_v38 = vpack.c.bf16 %v2311_v45, %v2304_v17 }
 0x42b   :  { %2188 = vrot.lane.b32.xlu0 %v3952_v15, %s3207_s19  ;;  %v2295_v15 = vand.u32 4294901760, %v4122_v8 }
 0x42d   :  { %v2296_v44 = vsub.f32 %v4122_v8, %v2295_v15 }
 0x42f   :  { %v2297_v1 = vand.u32 4294901760, %v2296_v44 }
 0x49e   :  { %v2172_v43 = vpop.xlane.xlu0 %2171 }
 0x49f   :  { %3187 = vrcp.f32 %v2172_v43 }
 0x4a2   :  { %v1631_v56 = vpop.xlane.xlu0 %1630 }
 0x4a3   :  { %3189 = vrcp.f32 %v1631_v56 }
 0x4a6   :  { %v2189_v14 = vpop.permute.xlu0 %2188 }
 0x4a7   :  { %v4125_v13 = vsel %vm1622_vm1, %v2189_v14, 0 }
 0x4a8   :  { %v2207_v48 = vand.u32 4294901760, %v4125_v13 }
 0x4a9   :  { %v3188_v22 = vpop.eup %3187 }
 0x4aa   :  { %v2174_v53 = vmul.f32 %v3188_v22, %v2172_v43  ;;  %v4132_v26 = vsub.f32 %v4125_v13, %v2207_v48  ;;  %v3085_v47 = vpack.c.bf16 %v2210_v58, %v2207_v48  ;;  %v4539_v58 = vld [vmem:[#allocation2_spill] sm:$0xff] }
 0x4ac   :  { %v2175_v51 = vsub.f32 2.0, %v2174_v53  ;;  %v2288_v32 = vand.u32 4294901760, %v4132_v26  ;;  %v3097_v39 = vpack.c.bf16 %v4122_v8, %v4132_v26  ;;  %v2710_v8 = vrot.slane %v3920_v61, %v4539_v58 }
 0x4ad   :  { %v3190_v33 = vpop.eup %3189 }
 0x4ae   :  { %v2176_v11 = vmul.f32 %v3188_v22, %v2175_v51  ;;  %v1633_v30 = vmul.f32 %v3190_v33, %v1631_v56  ;;  %v2289_v34 = vsub.f32 %v4132_v26, %v2288_v32 }
 0x4b0   :  { %v2177_v19 = vmul.f32 %v2176_v11, %v2172_v43  ;;  %v1634_v57 = vsub.f32 2.0, %v1633_v30  ;;  %v2290_v52 = vand.u32 4294901760, %v2289_v34 }
 0x4b2   :  { %v2178_v50 = vsub.f32 2.0, %v2177_v19  ;;  %v1635_v9 = vmul.f32 %v3190_v33, %v1634_v57  ;;  %v3091_v21 = vpack.c.bf16 %v2297_v1, %v2290_v52 }
 0x4b4   :  { %v1636_v24 = vmul.f32 %v1635_v9, %v1631_v56  ;;  %3092 = vmatpush3.bf16.xpose.msra.mxu0 %v3091_v21  ;;  %v2179_v35 = vmul.f32 %v2178_v50, %v2176_v11 }
 0x4b5   :  { %3093 = vmatprep.subr.bf16.mxu0 %v3203_v54 }
 0x4b6   :  { %v1637_v25 = vsub.f32 2.0, %v1636_v24  ;;  %v2180_v42 = vmul.f32 %v4087_v0, %v2179_v35 }
 0x4b8   :  { %2182 = vrot.lane.b32.xlu1 %v2180_v42, %s3207_s19  ;;  %v1638_v16 = vmul.f32 %v1637_v25, %v1635_v9 }
 0x4ba   :  { %v1639_v31 = vmul.f32 %v3186_v62, %v1638_v16 }
 0x4bc   :  { %3095 = vmatpush3.bf16.xpose.msra.mxu0 %v3094_v38  ;;  %v1640_v40 = vsel %vm1622_vm1, %v1639_v31, 0.0  ;;  %v1644_v41 = vsel %vm1622_vm1, %v1639_v31, 0 }
 0x4bd   :  { %v1727_v36 = vand.u32 4294901760, %v1644_v41  ;;  %1641 = vadd.xlane.f32.xlu0 %v1640_v40  ;;  %3096 = vmatprep.subr.bf16.mxu0 %v3203_v54 }
 0x4bf   :  { %v1728_v3 = vsub.f32 %v1644_v41, %v1727_v36 }
 0x4c1   :  { %v1729_v27 = vand.u32 4294901760, %v1728_v3 }
 0x4c3   :  { %v1730_v43 = vsub.f32 %v1728_v3, %v1729_v27 }
 0x4c5   :  { %v1731_v56 = vand.u32 4294901760, %v1730_v43 }
 0x4c7   :  { %2889 = vmatmul.mubr.f32.vlgmr.msra.gmra.mrb[2].mxu1 %v1731_v56 }
 0x4c8   :  { %3056 = vmatpush3.bf16.xpose.msra.mxu1 %v4004_v37  ;;  %2899 = vmatprep.mubr.msk.f32.mxu1 %vm3204_vm0, %v3205_v46 }
 0x4c9   :  { %3057 = vmatprep.subr.bf16.mxu1 %v3203_v54 }
 0x4d0   :  { %3059 = vmatpush3.bf16.xpose.msra.mxu1 %v4050_v2  ;;  %v3109_v2 = vpack.c.bf16 %v2295_v15, %v2288_v32 }
 0x4d1   :  { %3060 = vmatprep.subr.bf16.mxu1 %v3203_v54 }
 0x4d7   :  { %2900 = vmatmul.mubr.f32.vlgmr.msra.gmra.mrb[2].mxu1 %v1727_v36 }
 0x4d8   :  { %3062 = vmatpush3.bf16.xpose.msra.mxu1 %v3061_v60  ;;  %2910 = vmatprep.mubr.msk.f32.mxu1 %vm3204_vm0, %v3205_v46 }
 0x4d9   :  { %3063 = vmatprep.subr.bf16.mxu1 %v3203_v54 }
 0x4e0   :  { %3065 = vmatpush3.bf16.xpose.msra.mxu1 %v3064_v59 }
 0x4e1   :  { %3066 = vmatprep.subr.bf16.mxu1 %v3203_v54 }
 0x4e7   :  { %2911 = vmatmul.mubr.f32.vlgmr.msra.gmra.mrb[2].mxu1 %v1728_v3 }
 0x4e8   :  { %3068 = vmatpush3.bf16.xpose.msra.mxu1 %v4048_v28  ;;  %2921 = vmatprep.mubr.msk.f32.mxu1 %vm3204_vm0, %v3205_v46 }
 0x4e9   :  { %3069 = vmatprep.subr.bf16.mxu1 %v3203_v54 }
 0x4f0   :  { %3071 = vmatpush3.bf16.xpose.msra.mxu1 %v4062_v5 }
 0x4f1   :  { %3072 = vmatprep.subr.bf16.mxu1 %v3203_v54 }
 0x4f7   :  { %2922 = vmatmul.mubr.f32.vlgmr.msra.gmra.mrb[2].mxu1 %v1729_v27 }
 0x4f8   :  { %3074 = vmatpush3.bf16.xpose.msra.mxu1 %v4002_v49  ;;  %2932 = vmatprep.mubr.msk.f32.mxu1 %vm3204_vm0, %v3205_v46 }
 0x4f9   :  { %3075 = vmatprep.subr.bf16.mxu1 %v3203_v54 }
 0x500   :  { %3077 = vmatpush3.bf16.xpose.msra.mxu1 %v4040_v18 }
 0x501   :  { %3078 = vmatprep.subr.bf16.mxu1 %v3203_v54 }
 0x507   :  { %2933 = vmatmul.mubr.f32.vlgmr.msra.gmra.mrb[2].mxu1 %v1727_v36 }
 0x508   :  { %3080 = vmatpush3.bf16.xpose.msra.mxu1 %v4048_v28  ;;  %2943 = vmatprep.mubr.msk.f32.mxu1 %vm3204_vm0, %v3205_v46 }
 0x509   :  { %3081 = vmatprep.subr.bf16.mxu1 %v3203_v54 }
 0x510   :  { %3083 = vmatpush3.bf16.xpose.msra.mxu1 %v4062_v5  ;;  %v2722_v5 = vld [vmem:[%s4235_s2 + $0x8] sm:$0xff] }
 0x511   :  { %3084 = vmatprep.subr.bf16.mxu1 %v3203_v54 }
 0x517   :  { %2944 = vmatmul.mubr.f32.vlgmr.msra.gmra.mrb[2].mxu1 %v1727_v36 }
 0x518   :  { %3086 = vmatpush3.bf16.xpose.msra.mxu1 %v3085_v47  ;;  %2954 = vmatprep.mubr.msk.f32.mxu1 %vm3204_vm0, %v3205_v46 }
 0x519   :  { %3087 = vmatprep.subr.bf16.mxu1 %v3203_v54 }
 0x520   :  { %3089 = vmatpush3.bf16.xpose.msra.mxu1 %v4103_v12 }
 0x52a   :  { %v2183_v55 = vpop.permute.xlu1 %2182 }
 0x52b   :  { %v2196_v60 = vsel %vm1622_vm1, %v2183_v55, 0  ;;  %v2185_v49 = vsel %vm1622_vm1, %v2183_v55, 0.0 }
 0x52c   :  { %v2275_v37 = vand.u32 4294901760, %v2196_v60  ;;  %2186 = vadd.xlane.f32.xlu1 %v2185_v49 }
 0x52e   :  { %v2276_v10 = vsub.f32 %v2196_v60, %v2275_v37  ;;  %2966 = vmatmul.mubr.f32.vlgmr.msra.gmra.mrb[2].mxu0 %v2275_v37 }
 0x52f   :  { %3098 = vmatpush3.bf16.xpose.msra.mxu0 %v3097_v39  ;;  %2976 = vmatprep.mubr.msk.f32.mxu0 %vm3204_vm0, %v3205_v46 }
 0x530   :  { %v2277_v59 = vand.u32 4294901760, %v2276_v10  ;;  %3099 = vmatprep.subr.bf16.mxu0 %v3203_v54 }
 0x532   :  { %v2278_v18 = vsub.f32 %v2276_v10, %v2277_v59 }
 0x534   :  { %v2279_v28 = vand.u32 4294901760, %v2278_v18 }
 0x536   :  { %2955 = vmatmul.mubr.f32.vlgmr.msra.gmra.mrb[4].mxu1 %v2279_v28 }
 0x537   :  { %3101 = vmatpush3.bf16.xpose.msra.mxu0 %v3100_v7 }
 0x538   :  { %3102 = vmatprep.subr.bf16.mxu0 %v3203_v54 }
 0x53d   :  { %2712 = vrot.lane.b32.xlu1 %v2710_v8, %s3208_s24 }
 0x53e   :  { %2977 = vmatmul.mubr.f32.vlgmr.msra.gmra.mrb[2].mxu0 %v2276_v10 }
 0x53f   :  { %3104 = vmatpush3.bf16.xpose.msra.mxu0 %v3085_v47  ;;  %2987 = vmatprep.mubr.msk.f32.mxu0 %vm3204_vm0, %v3205_v46 }
 0x540   :  { %3105 = vmatprep.subr.bf16.mxu0 %v3203_v54 }
 0x547   :  { %3107 = vmatpush3.bf16.xpose.msra.mxu0 %v4103_v12 }
 0x548   :  { %3108 = vmatprep.subr.bf16.mxu0 %v3203_v54 }
 0x54a   :  { %v1642_v0 = vpop.xlane.xlu0 %1641 }
 0x54b   :  { %v2143_v62 = vmul.f32 %v2722_v5, %v1642_v0 }
 0x54e   :  { %2988 = vmatmul.mubr.f32.vlgmr.msra.gmra.mrb[2].mxu0 %v2277_v59 }
 0x54f   :  { %3110 = vmatpush3.bf16.xpose.msra.mxu0 %v3109_v2  ;;  %2998 = vmatprep.mubr.msk.f32.mxu0 %vm3204_vm0, %v3205_v46 }
 0x550   :  { %3111 = vmatprep.subr.bf16.mxu0 %v3203_v54 }
 0x557   :  { %3113 = vmatpush3.bf16.xpose.msra.mxu0 %v4111_v20 }
 0x558   :  { %3114 = vmatprep.subr.bf16.mxu0 %v3203_v54 }
 0x55e   :  { %2999 = vmatmul.mubr.f32.vlgmr.msra.gmra.mrb[2].mxu0 %v2275_v37 }
 0x55f   :  { %3116 = vmatpush3.bf16.xpose.msra.mxu0 %v3085_v47  ;;  %3009 = vmatprep.mubr.msk.f32.mxu0 %vm3204_vm0, %v3205_v46 }
 0x560   :  { %3117 = vmatprep.subr.bf16.mxu0 %v3203_v54 }
 0x567   :  { %3119 = vmatpush3.bf16.xpose.msra.mxu0 %v4103_v12 }
 0x56e   :  { %3010 = vmatmul.mubr.f32.vlgmr.msra.gmra.mrb[2].mxu0 %v2275_v37 }
 0x5b9   :  { %v2187_v14 = vpop.xlane.xlu1 %2186 }
 0x5ba   :  { %v2691_v15 = vmul.f32 %v2722_v5, %v2187_v14 }
 0x5bd   :  { %v2713_v21 = vpop.permute.xlu1 %2712 }
 0x5ea   :  { %v2139_v4 = vpop.f32.mrb[2].mxu1 }
 0x5eb   :  { %v2144_v7 = vsub.f32 %v2139_v4, %v2143_v62  ;;  %v2945_v20 = vpop.f32.mrb[3].mxu1 }
 0x5ed   :  { %v2147_v63 = vmul.f32 %v2723_v6, %v2144_v7 }
 0x5ef   :  { %v2148_v46 = vsel %vm1131_vm2, %v2147_v63, 0.0 }
 0x5f0   :  { %2149 = vadd.xlane.f32.xlu0 %v2148_v46 }
 0x609   :  { %v2281_v54 = vpop.f32.mrb[4].mxu1 }
 0x60a   :  { %v2956_v12 = vpop.f32.mrb[5].mxu1 }
 0x641   :  { %v2687_v13 = vpop.f32.mrb[2].mxu0 }
 0x642   :  { %v3122_v48 = vadd.f32 %v2687_v13, %v2281_v54  ;;  %v3011_v22 = vpop.f32.mrb[3].mxu0 }
 0x644   :  { %v2692_v53 = vsub.f32 %v3122_v48, %v2691_v15 }
 0x646   :  { %v2693_v26 = vmul.f32 %v2723_v6, %v2692_v53 }
 0x648   :  { %v2694_v44 = vsel %vm1131_vm2, %v2693_v26, 0.0 }
 0x649   :  { %2695 = vadd.xlane.f32.xlu0 %v2694_v44 }
 0x67d   :  { %v2150_v51 = vpop.xlane.xlu0 %2149 }
 0x67e   :  { %v2151_v32 = vrot.slane %v2150_v51, 4 }
 0x680   :  { %v2152_v33 = vadd.f32 %v2151_v32, %v2150_v51 }
 0x682   :  { %v2153_v11 = vrot.slane %v2152_v33, 2 }
 0x684   :  { %v2154_v30 = vadd.f32 %v2153_v11, %v2152_v33 }
 0x686   :  { %v2155_v34 = vrot.slane %v2154_v30, 1 }
 0x688   :  { %v2156_v1 = vadd.f32 %v2155_v34, %v2154_v30 }
 0x68a   :  { %3149 = vpush %v2156_v1 }
 0x6bb   :  { %s3150_s2 = spop %3149 }
 0x6bc   :  { %v2158_v29 = vstv %s3150_s2 }
 0x6d6   :  { %v2696_v61 = vpop.xlane.xlu0 %2695 }
 0x6d7   :  { %v2697_v19 = vrot.slane %v2696_v61, 4 }
 0x6d9   :  { %v2698_v57 = vadd.f32 %v2697_v19, %v2696_v61 }
 0x6db   :  { %v2699_v52 = vrot.slane %v2698_v57, 2 }
 0x6dd   :  { %v2700_v23 = vadd.f32 %v2699_v52, %v2698_v57 }
 0x6df   :  { %v2701_v50 = vrot.slane %v2700_v23, 1 }
 0x6e1   :  { %v2702_v9 = vadd.f32 %v2701_v50, %v2700_v23 }
 0x6e3   :  { %3151 = vpush %v2702_v9 }
 0x714   :  { %s3152_s25 = spop %3151 }
 0x715   :  { %v2704_v24 = vstv %s3152_s25 }
 0x716   :  { %v2706_v35 = vsel %vm2705_vm4, %v2158_v29, %v2704_v24 }
 0x717   :  { %v2715_v45 = vadd.f32 %v2713_v21, %v2706_v35 }
 0x719   :  { %2717 = vst.msk [vmem:[%s4236_s3] sm:$0x3] %vm2716_vm5, %v2715_v45 }

</bundles_post_ra>
